<compile_context>
chip_gen: v7x
topology: tpu7x:2x2x1
jax: 0.10.0
libtpu: 0.0.40
codegen_flags: <defaults>
</compile_context>

<pallas_src>
import functools

import numpy as np

import jax
import jax.numpy as jnp
from jax import lax
from jax.experimental import pallas as pl
from jax.experimental.pallas import tpu as pltpu

# ---------------- problem sizes ----------------
N, H, W = 2, 16, 16
C = 8            # in_planes (expansion = 1)
BW = 4           # bottleneck_width
HW = H * W       # 256 lanes per image (multiple of 128)
EPS = 1e-5

R = 8            # padded sublane rows (BW padded up to R; here R == C)
NTAP = 9         # 3x3 taps
W_SHIFT = W.bit_length() - 1

assert W & (W - 1) == 0 and HW % 128 == 0
assert BW <= R and C <= R

# Packed-parameter column layout: [ W0 | W1 (9 taps) | W2 | b0 b1 b2 sB tB ]
C_W0 = 0
C_W1 = C_W0 + R            # 8
C_W2 = C_W1 + NTAP * R     # 80
C_B0 = C_W2 + R            # 88
C_B1 = C_B0 + 1
C_B2 = C_B0 + 2
C_SB = C_B0 + 3
C_TB = C_B0 + 4
PCOLS = 128
assert C_TB < PCOLS


# ---------------- Pallas kernel ----------------
def _basic_block_a_kernel(x_ref, p_ref, o_ref, im_ref, *, lanes):
    f32 = jnp.float32
    hi = lax.Precision.HIGHEST

    x = x_ref[...]                         # (C, lanes)   channels on sublanes
    P = p_ref[...]                         # (R, PCOLS)   folded weights/biases

    W0 = P[:, C_W0:C_W0 + R]               # (R, R)   rows >= BW are zero
    W1 = P[:, C_W1:C_W1 + NTAP * R]        # (R, 9R)
    W2 = P[:, C_W2:C_W2 + R]               # (R, R)   cols >= BW are zero
    b0 = P[:, C_B0:C_B0 + 1]
    b1 = P[:, C_B1:C_B1 + 1]
    b2 = P[:, C_B2:C_B2 + 1]
    sB = P[:, C_SB:C_SB + 1]
    tB = P[:, C_TB:C_TB + 1]

    # ---- conv0 (1x1) + bn0 + relu : one MXU dot ----
    h0 = jnp.maximum(
        jnp.dot(W0, x, precision=hi, preferred_element_type=f32) + b0, 0.0)

    # ---- conv1 (3x3, padding=1): 9-tap im2col stack -> one MXU dot ----
    # Zero-pad the flattened lane axis by one aligned 128-lane block per side
    # so every tap is a static lane slice; iota masks zero the w-boundary and
    # the h-boundary (which is also the cross-image boundary) terms.
    zpad = jnp.zeros((R, 128), f32)
    h0p = jnp.concatenate([zpad, h0, zpad], axis=1)     # (R, lanes + 256)

    pos = lax.broadcasted_iota(jnp.int32, (R, lanes), 1) & (HW - 1)
    ww = pos & (W - 1)
    hh = pos >> W_SHIFT
    m_w = {-1: ww >= 1, 1: ww <= W - 2}
    m_h = {-1: hh >= 1, 1: hh <= H - 2}

    for ky in range(3):
        for kx in range(3):
            dy, dx = ky - 1, kx - 1
            off = dy * W + dx
            s = h0p[:, 128 + off:128 + off + lanes]     # s[:, l] = h0[:, l+off]
            if dy != 0 and dx != 0:
                s = jnp.where(m_h[dy] & m_w[dx], s, 0.0)
            elif dy != 0:
                s = jnp.where(m_h[dy], s, 0.0)
            elif dx != 0:
                s = jnp.where(m_w[dx], s, 0.0)
            t = ky * 3 + kx
            im_ref[t * R:(t + 1) * R, :] = s            # 8-aligned sublane store

    h1 = jnp.maximum(
        jnp.dot(W1, im_ref[...], precision=hi, preferred_element_type=f32)
        + b1, 0.0)

    # ---- conv2 (1x1) + bn2 + identity shortcut + relu (ResBottleBlock out) ----
    h2 = jnp.dot(W2, h1, precision=hi, preferred_element_type=f32) + b2
    p_path = jnp.maximum(h2 + x, 0.0)

    # ---- BasicBlock_A: bn + identity shortcut + relu ----
    o_ref[...] = jnp.maximum(p_path * sB + tB + x, 0.0)


# ---------------- host-side parameter folding / packing (run once) ----------------
def pack_params(params):
    """Fold BN scales into conv weights and pack everything into one (R,128)
    lane-dense tile.  Pure numpy on host — call once per weight set."""
    w0, w1, w2, (s0, t0), (s1, t1), (s2, t2), (sB, tB) = jax.tree_util.tree_map(
        lambda a: np.asarray(a, np.float32), params)

    w0f = s0[:, None] * w0                       # (BW, C)       conv0, OI
    w1f = s1[:, None, None, None] * w1           # (BW, BW, 3,3) conv1, OIHW
    w2f = s2[:, None] * w2                       # (C, BW)       conv2, OI

    P = np.zeros((R, PCOLS), np.float32)
    P[:BW, C_W0:C_W0 + C] = w0f
    for ky in range(3):
        for kx in range(3):
            t = ky * 3 + kx
            P[:BW, C_W1 + t * R:C_W1 + t * R + BW] = w1f[:, :, ky, kx]
    P[:C, C_W2:C_W2 + BW] = w2f
    P[:BW, C_B0] = t0
    P[:BW, C_B1] = t1
    P[:C, C_B2] = t2
    P[:C, C_SB] = sB
    P[:C, C_TB] = tB
    return jnp.asarray(P)


# ---------------- jitted wrapper ----------------
@functools.partial(jax.jit, static_argnames=("images_per_step",))
def _basic_block_a_jit(x_nchw, P, *, images_per_step):
    n, c, h, w = x_nchw.shape
    assert (c, h, w) == (C, H, W) and n % images_per_step == 0
    lanes = n * HW
    lanes_blk = images_per_step * HW

    # channels -> sublanes, image x spatial -> lanes (lane-folded batch)
    x2d = jnp.transpose(x_nchw, (1, 0, 2, 3)).reshape(C, lanes)

    out2d = pl.pallas_call(
        functools.partial(_basic_block_a_kernel, lanes=lanes_blk),
        out_shape=jax.ShapeDtypeStruct((C, lanes), jnp.float32),
        grid_spec=pltpu.PrefetchScalarGridSpec(
            num_scalar_prefetch=0,
            grid=(n // images_per_step,),
            in_specs=[
                pl.BlockSpec((C, lanes_blk), lambda i: (0, i)),
                pl.BlockSpec((R, PCOLS), lambda i: (0, 0)),   # constant block
            ],
            out_specs=pl.BlockSpec((C, lanes_blk), lambda i: (0, i)),
            scratch_shapes=[pltpu.VMEM((NTAP * R, lanes_blk), jnp.float32)],
        ),
        compiler_params=pltpu.CompilerParams(
            dimension_semantics=("arbitrary",)),
    )(x2d, P)

    return out2d.reshape(C, n, H, W).transpose(1, 0, 2, 3)


def basic_block_a(x_nchw, P, images_per_step=None):
    # Default: the WHOLE batch in one grid step on every TPU generation —
    # per-step overhead (~0.35 us) rivals this kernel's entire compute, so
    # splitting N=2 across steps / TensorCores does not pay.  Pass
    # images_per_step for pipelined multi-step execution at large batches.
    if images_per_step is None:
        images_per_step = x_nchw.shape[0]
    return _basic_block_a_jit(x_nchw, P, images_per_step=images_per_step)


# ---------------- deterministic parameter init ----------------
def make_params(key):
    ks = jax.random.split(key, 7)
    w0 = 0.2 * jax.random.normal(ks[0], (BW, C), jnp.float32)          # conv0 OI
    w1 = 0.2 * jax.random.normal(ks[1], (BW, BW, 3, 3), jnp.float32)   # conv1 OIHW
    w2 = 0.2 * jax.random.normal(ks[2], (C, BW), jnp.float32)          # conv2 OI

    def bn(k, ch):
        kg, kb, km, kv = jax.random.split(k, 4)
        gamma = jax.random.uniform(kg, (ch,), jnp.float32, 0.5, 1.5)
        beta = 0.1 * jax.random.normal(kb, (ch,), jnp.float32)
        mean = 0.1 * jax.random.normal(km, (ch,), jnp.float32)
        var = jax.random.uniform(kv, (ch,), jnp.float32, 0.5, 1.5)
        scale = gamma / jnp.sqrt(var + EPS)
        shift = beta - mean * scale
        return scale, shift

    return (w0, w1, w2, bn(ks[3], BW), bn(ks[4], BW), bn(ks[5], C), bn(ks[6], C))


# ---------------- pure-JAX reference (correctness check) ----------------
def reference(x, params):
    w0, w1, w2, (s0, t0), (s1, t1), (s2, t2), (sB, tB) = params

    def conv(v, wt):
        dn = lax.conv_dimension_numbers(v.shape, wt.shape,
                                        ('NCHW', 'OIHW', 'NCHW'))
        return lax.conv_general_dilated(v, wt, (1, 1), 'SAME',
                                        dimension_numbers=dn,
                                        precision=lax.Precision.HIGHEST)

    def bn(v, s, t):
        return v * s[None, :, None, None] + t[None, :, None, None]

    h0 = jnp.maximum(bn(conv(x, w0.reshape(BW, C, 1, 1)), s0, t0), 0.0)
    h1 = jnp.maximum(bn(conv(h0, w1), s1, t1), 0.0)
    h2 = bn(conv(h1, w2.reshape(C, BW, 1, 1)), s2, t2) + x
    p = jnp.maximum(h2, 0.0)
    return jnp.maximum(bn(p, sB, tB) + x, 0.0)


if __name__ == "__main__":
    key = jax.random.PRNGKey(0)
    kx, kp = jax.random.split(key)
    # NCHW, same as the PyTorch module: in_planes=8, 16x16 spatial, batch 2.
    x = jax.random.normal(kx, (N, C, H, W), jnp.float32)
    params = make_params(kp)

    P = pack_params(params)            # host-side, once per weight set
    out = jax.block_until_ready(basic_block_a(x, P))
    ref = jax.block_until_ready(reference(x, params))

    assert out.shape == (N, C, H, W)
    err = float(jnp.max(jnp.abs(out - ref)))
    assert jnp.allclose(out, ref, atol=2e-4, rtol=2e-4), err

    print("KERNEL_OK")
</pallas_src>

<mosaic_0001>
module attributes {stable_mosaic.version = 11 : i64} {
  func.func @_basic_block_a_kernel(%arg0: i32, %arg1: memref<8x512xf32, #tpu.memory_space<vmem>>, %arg2: memref<8x128xf32, #tpu.memory_space<vmem>>, %arg3: memref<8x512xf32, #tpu.memory_space<vmem>>, %arg4: memref<72x512xf32, #tpu.memory_space<vmem>>) attributes {dimension_semantics = [#tpu.dimension_semantics<arbitrary>], iteration_bounds = array<i64: 1>, scalar_prefetch = 0 : i64, scratch_operands = 1 : i64, tpu.core_type = #tpu.core_type<tc>, window_params = [{transform_indices = @transform_0, window_bounds = array<i64: 8, 512>}, {pipeline_mode = #tpu.pipeline_mode<synchronous>, transform_indices = @transform_1, window_bounds = array<i64: 8, 128>}, {transform_indices = @transform_2, window_bounds = array<i64: 8, 512>}]} {
    %c0 = arith.constant 0 : index
    %c0_0 = arith.constant 0 : index
    %0 = vector.load %arg1[%c0, %c0_0] : memref<8x512xf32, #tpu.memory_space<vmem>>, vector<8x512xf32>
    %c0_1 = arith.constant 0 : index
    %c0_2 = arith.constant 0 : index
    %1 = vector.load %arg2[%c0_1, %c0_2] : memref<8x128xf32, #tpu.memory_space<vmem>>, vector<8x128xf32>
    %2 = vector.extract_strided_slice %1 {offsets = [0, 0], sizes = [8, 8], strides = [1, 1]} : vector<8x128xf32> to vector<8x8xf32>
    %3 = vector.extract_strided_slice %1 {offsets = [0, 8], sizes = [8, 72], strides = [1, 1]} : vector<8x128xf32> to vector<8x72xf32>
    %4 = vector.extract_strided_slice %1 {offsets = [0, 80], sizes = [8, 8], strides = [1, 1]} : vector<8x128xf32> to vector<8x8xf32>
    %5 = vector.extract_strided_slice %1 {offsets = [0, 88], sizes = [8, 1], strides = [1, 1]} : vector<8x128xf32> to vector<8x1xf32>
    %6 = vector.extract_strided_slice %1 {offsets = [0, 89], sizes = [8, 1], strides = [1, 1]} : vector<8x128xf32> to vector<8x1xf32>
    %7 = vector.extract_strided_slice %1 {offsets = [0, 90], sizes = [8, 1], strides = [1, 1]} : vector<8x128xf32> to vector<8x1xf32>
    %8 = vector.extract_strided_slice %1 {offsets = [0, 91], sizes = [8, 1], strides = [1, 1]} : vector<8x128xf32> to vector<8x1xf32>
    %9 = vector.extract_strided_slice %1 {offsets = [0, 92], sizes = [8, 1], strides = [1, 1]} : vector<8x128xf32> to vector<8x1xf32>
    %cst = arith.constant dense<0.000000e+00> : vector<8x512xf32>
    %10 = tpu.matmul %2, %0, %cst {dimension_numbers = #tpu.dot_dimension_numbers<[1], [0], [0], [1], [0, 0, 1, 1], [], []>, precision = #tpu.contract_precision<fp32>} : vector<8x8xf32>, vector<8x512xf32>, vector<8x512xf32> -> vector<8x512xf32>
    %11 = vector.broadcast %5 : vector<8x1xf32> to vector<8x512xf32>
    %12 = arith.addf %10, %11 : vector<8x512xf32>
    %cst_3 = arith.constant 0.000000e+00 : f32
    %13 = vector.broadcast %cst_3 : f32 to vector<8x512xf32>
    %14 = arith.maximumf %12, %13 : vector<8x512xf32>
    %cst_4 = arith.constant 0.000000e+00 : f32
    %15 = vector.broadcast %cst_4 : f32 to vector<8x128xf32>
    %16 = tpu.concatenate %15, %14, %15 in 1 : vector<8x128xf32>, vector<8x512xf32>, vector<8x128xf32> -> vector<8x768xf32>
    %17 = tpu.iota {dimensions = array<i32: 1>} : vector<8x512xi32>
    %c255_i32 = arith.constant 255 : i32
    %18 = vector.broadcast %c255_i32 : i32 to vector<8x512xi32>
    %19 = arith.andi %17, %18 : vector<8x512xi32>
    %c15_i32 = arith.constant 15 : i32
    %20 = vector.broadcast %c15_i32 : i32 to vector<8x512xi32>
    %21 = arith.andi %19, %20 : vector<8x512xi32>
    %c4_i32 = arith.constant 4 : i32
    %22 = vector.broadcast %c4_i32 : i32 to vector<8x512xi32>
    %23 = arith.shrsi %19, %22 : vector<8x512xi32>
    %c1_i32 = arith.constant 1 : i32
    %24 = vector.broadcast %c1_i32 : i32 to vector<8x512xi32>
    %25 = arith.cmpi sge, %21, %24 : vector<8x512xi32>
    %c14_i32 = arith.constant 14 : i32
    %26 = vector.broadcast %c14_i32 : i32 to vector<8x512xi32>
    %27 = arith.cmpi sle, %21, %26 : vector<8x512xi32>
    %c1_i32_5 = arith.constant 1 : i32
    %28 = vector.broadcast %c1_i32_5 : i32 to vector<8x512xi32>
    %29 = arith.cmpi sge, %23, %28 : vector<8x512xi32>
    %c14_i32_6 = arith.constant 14 : i32
    %30 = vector.broadcast %c14_i32_6 : i32 to vector<8x512xi32>
    %31 = arith.cmpi sle, %23, %30 : vector<8x512xi32>
    %32 = vector.extract_strided_slice %16 {offsets = [0, 111], sizes = [8, 512], strides = [1, 1]} : vector<8x768xf32> to vector<8x512xf32>
    %33 = arith.andi %29, %25 : vector<8x512xi1>
    %cst_7 = arith.constant 0.000000e+00 : f32
    %34 = vector.broadcast %cst_7 : f32 to vector<8x512xf32>
    %35 = arith.select %33, %32, %34 : vector<8x512xi1>, vector<8x512xf32>
    %c0_8 = arith.constant 0 : index
    %c0_9 = arith.constant 0 : index
    %36 = vector.load %arg4[%c0_8, %c0_9] : memref<72x512xf32, #tpu.memory_space<vmem>>, vector<8x512xf32>
    tpu.vector_store %arg4[%c0_8, %c0_9], %35 {strides = array<i32>} : memref<72x512xf32, #tpu.memory_space<vmem>>, vector<8x512xf32>,
    %37 = vector.extract_strided_slice %16 {offsets = [0, 112], sizes = [8, 512], strides = [1, 1]} : vector<8x768xf32> to vector<8x512xf32>
    %cst_10 = arith.constant 0.000000e+00 : f32
    %38 = vector.broadcast %cst_10 : f32 to vector<8x512xf32>
    %39 = arith.select %29, %37, %38 : vector<8x512xi1>, vector<8x512xf32>
    %c8 = arith.constant 8 : index
    %c0_11 = arith.constant 0 : index
    %40 = vector.load %arg4[%c8, %c0_11] : memref<72x512xf32, #tpu.memory_space<vmem>>, vector<8x512xf32>
    tpu.vector_store %arg4[%c8, %c0_11], %39 {strides = array<i32>} : memref<72x512xf32, #tpu.memory_space<vmem>>, vector<8x512xf32>,
    %41 = vector.extract_strided_slice %16 {offsets = [0, 113], sizes = [8, 512], strides = [1, 1]} : vector<8x768xf32> to vector<8x512xf32>
    %42 = arith.andi %29, %27 : vector<8x512xi1>
    %cst_12 = arith.constant 0.000000e+00 : f32
    %43 = vector.broadcast %cst_12 : f32 to vector<8x512xf32>
    %44 = arith.select %42, %41, %43 : vector<8x512xi1>, vector<8x512xf32>
    %c16 = arith.constant 16 : index
    %c0_13 = arith.constant 0 : index
    %45 = vector.load %arg4[%c16, %c0_13] : memref<72x512xf32, #tpu.memory_space<vmem>>, vector<8x512xf32>
    tpu.vector_store %arg4[%c16, %c0_13], %44 {strides = array<i32>} : memref<72x512xf32, #tpu.memory_space<vmem>>, vector<8x512xf32>,
    %46 = vector.extract_strided_slice %16 {offsets = [0, 127], sizes = [8, 512], strides = [1, 1]} : vector<8x768xf32> to vector<8x512xf32>
    %cst_14 = arith.constant 0.000000e+00 : f32
    %47 = vector.broadcast %cst_14 : f32 to vector<8x512xf32>
    %48 = arith.select %25, %46, %47 : vector<8x512xi1>, vector<8x512xf32>
    %c24 = arith.constant 24 : index
    %c0_15 = arith.constant 0 : index
    %49 = vector.load %arg4[%c24, %c0_15] : memref<72x512xf32, #tpu.memory_space<vmem>>, vector<8x512xf32>
    tpu.vector_store %arg4[%c24, %c0_15], %48 {strides = array<i32>} : memref<72x512xf32, #tpu.memory_space<vmem>>, vector<8x512xf32>,
    %50 = vector.extract_strided_slice %16 {offsets = [0, 128], sizes = [8, 512], strides = [1, 1]} : vector<8x768xf32> to vector<8x512xf32>
    %c32 = arith.constant 32 : index
    %c0_16 = arith.constant 0 : index
    %51 = vector.load %arg4[%c32, %c0_16] : memref<72x512xf32, #tpu.memory_space<vmem>>, vector<8x512xf32>
    tpu.vector_store %arg4[%c32, %c0_16], %50 {strides = array<i32>} : memref<72x512xf32, #tpu.memory_space<vmem>>, vector<8x512xf32>,
    %52 = vector.extract_strided_slice %16 {offsets = [0, 129], sizes = [8, 512], strides = [1, 1]} : vector<8x768xf32> to vector<8x512xf32>
    %cst_17 = arith.constant 0.000000e+00 : f32
    %53 = vector.broadcast %cst_17 : f32 to vector<8x512xf32>
    %54 = arith.select %27, %52, %53 : vector<8x512xi1>, vector<8x512xf32>
    %c40 = arith.constant 40 : index
    %c0_18 = arith.constant 0 : index
    %55 = vector.load %arg4[%c40, %c0_18] : memref<72x512xf32, #tpu.memory_space<vmem>>, vector<8x512xf32>
    tpu.vector_store %arg4[%c40, %c0_18], %54 {strides = array<i32>} : memref<72x512xf32, #tpu.memory_space<vmem>>, vector<8x512xf32>,
    %56 = vector.extract_strided_slice %16 {offsets = [0, 143], sizes = [8, 512], strides = [1, 1]} : vector<8x768xf32> to vector<8x512xf32>
    %57 = arith.andi %31, %25 : vector<8x512xi1>
    %cst_19 = arith.constant 0.000000e+00 : f32
    %58 = vector.broadcast %cst_19 : f32 to vector<8x512xf32>
    %59 = arith.select %57, %56, %58 : vector<8x512xi1>, vector<8x512xf32>
    %c48 = arith.constant 48 : index
    %c0_20 = arith.constant 0 : index
    %60 = vector.load %arg4[%c48, %c0_20] : memref<72x512xf32, #tpu.memory_space<vmem>>, vector<8x512xf32>
    tpu.vector_store %arg4[%c48, %c0_20], %59 {strides = array<i32>} : memref<72x512xf32, #tpu.memory_space<vmem>>, vector<8x512xf32>,
    %61 = vector.extract_strided_slice %16 {offsets = [0, 144], sizes = [8, 512], strides = [1, 1]} : vector<8x768xf32> to vector<8x512xf32>
    %cst_21 = arith.constant 0.000000e+00 : f32
    %62 = vector.broadcast %cst_21 : f32 to vector<8x512xf32>
    %63 = arith.select %31, %61, %62 : vector<8x512xi1>, vector<8x512xf32>
    %c56 = arith.constant 56 : index
    %c0_22 = arith.constant 0 : index
    %64 = vector.load %arg4[%c56, %c0_22] : memref<72x512xf32, #tpu.memory_space<vmem>>, vector<8x512xf32>
    tpu.vector_store %arg4[%c56, %c0_22], %63 {strides = array<i32>} : memref<72x512xf32, #tpu.memory_space<vmem>>, vector<8x512xf32>,
    %65 = vector.extract_strided_slice %16 {offsets = [0, 145], sizes = [8, 512], strides = [1, 1]} : vector<8x768xf32> to vector<8x512xf32>
    %66 = arith.andi %31, %27 : vector<8x512xi1>
    %cst_23 = arith.constant 0.000000e+00 : f32
    %67 = vector.broadcast %cst_23 : f32 to vector<8x512xf32>
    %68 = arith.select %66, %65, %67 : vector<8x512xi1>, vector<8x512xf32>
    %c64 = arith.constant 64 : index
    %c0_24 = arith.constant 0 : index
    %69 = vector.load %arg4[%c64, %c0_24] : memref<72x512xf32, #tpu.memory_space<vmem>>, vector<8x512xf32>
    tpu.vector_store %arg4[%c64, %c0_24], %68 {strides = array<i32>} : memref<72x512xf32, #tpu.memory_space<vmem>>, vector<8x512xf32>,
    %c0_25 = arith.constant 0 : index
    %c0_26 = arith.constant 0 : index
    %70 = vector.load %arg4[%c0_25, %c0_26] : memref<72x512xf32, #tpu.memory_space<vmem>>, vector<72x512xf32>
    %cst_27 = arith.constant dense<0.000000e+00> : vector<8x512xf32>
    %71 = tpu.matmul %3, %70, %cst_27 {dimension_numbers = #tpu.dot_dimension_numbers<[1], [0], [0], [1], [0, 0, 1, 1], [], []>, precision = #tpu.contract_precision<fp32>} : vector<8x72xf32>, vector<72x512xf32>, vector<8x512xf32> -> vector<8x512xf32>
    %72 = vector.broadcast %6 : vector<8x1xf32> to vector<8x512xf32>
    %73 = arith.addf %71, %72 : vector<8x512xf32>
    %cst_28 = arith.constant 0.000000e+00 : f32
    %74 = vector.broadcast %cst_28 : f32 to vector<8x512xf32>
    %75 = arith.maximumf %73, %74 : vector<8x512xf32>
    %cst_29 = arith.constant dense<0.000000e+00> : vector<8x512xf32>
    %76 = tpu.matmul %4, %75, %cst_29 {dimension_numbers = #tpu.dot_dimension_numbers<[1], [0], [0], [1], [0, 0, 1, 1], [], []>, precision = #tpu.contract_precision<fp32>} : vector<8x8xf32>, vector<8x512xf32>, vector<8x512xf32> -> vector<8x512xf32>
    %77 = vector.broadcast %7 : vector<8x1xf32> to vector<8x512xf32>
    %78 = arith.addf %76, %77 : vector<8x512xf32>
    %79 = arith.addf %78, %0 : vector<8x512xf32>
    %cst_30 = arith.constant 0.000000e+00 : f32
    %80 = vector.broadcast %cst_30 : f32 to vector<8x512xf32>
    %81 = arith.maximumf %79, %80 : vector<8x512xf32>
    %82 = vector.broadcast %8 : vector<8x1xf32> to vector<8x512xf32>
    %83 = arith.mulf %81, %82 : vector<8x512xf32>
    %84 = vector.broadcast %9 : vector<8x1xf32> to vector<8x512xf32>
    %85 = arith.addf %83, %84 : vector<8x512xf32>
    %86 = arith.addf %85, %0 : vector<8x512xf32>
    %cst_31 = arith.constant 0.000000e+00 : f32
    %87 = vector.broadcast %cst_31 : f32 to vector<8x512xf32>
    %88 = arith.maximumf %86, %87 : vector<8x512xf32>
    %c0_32 = arith.constant 0 : index
    %c0_33 = arith.constant 0 : index
    %89 = vector.load %arg3[%c0_32, %c0_33] : memref<8x512xf32, #tpu.memory_space<vmem>>, vector<8x512xf32>
    tpu.vector_store %arg3[%c0_32, %c0_33], %88 {strides = array<i32>} : memref<8x512xf32, #tpu.memory_space<vmem>>, vector<8x512xf32>,
    return
  }
  func.func @transform_0(%arg0: i32) -> (i32, i32) {
    %c0_i32 = arith.constant 0 : i32
    %c0_i32_0 = arith.constant 0 : i32
    return %c0_i32, %arg0 : i32, i32
  }
  func.func @transform_1(%arg0: i32) -> (i32, i32) {
    %c0_i32 = arith.constant 0 : i32
    %c0_i32_0 = arith.constant 0 : i32
    %c0_i32_1 = arith.constant 0 : i32
    return %c0_i32, %c0_i32_0 : i32, i32
  }
  func.func @transform_2(%arg0: i32) -> (i32, i32) {
    %c0_i32 = arith.constant 0 : i32
    %c0_i32_0 = arith.constant 0 : i32
    return %c0_i32, %arg0 : i32, i32
  }
}

</mosaic_0001>

<bundles_post_ra>
// kernel: _basic_block_a_jit.1
= control target key start
LH: loop header
LB: loop body
LE: loop exit
PB: predicated region body
PF: predicated region fallthrough
CT: control target
= control target key end

     0   :  { %vm5114_vm0 = vcmask 64512   ;;  %v5109_v3 = vmov 0.0   ;;  %v3897_v9 = vmov 88   ;;  %s3898_s19 = smov 17   ;;  %s3899_s20 = smov 15   ;;  %v958_v54 = vlaneseq  ;;  %s5102_s0 = inlined_call_operand.vmem [shape: f32[8,512], index: 0, kind: input, shape index: {}]   ;;  %s5103_s1 = inlined_call_operand.vmem [shape: f32[8,128], index: 1, kind: input, shape index: {}]   ;;  %s5104_s2 = inlined_call_operand.vmem [shape: f32[8,512], index: 2, kind: output, shape index: {}]  }
   0x1   :  { %v12_v0 = vld [vmem:[%s5102_s0 + $0x8] sm:$0xff]  ;;  %v14_v1 = vld [vmem:[%s5102_s0 + $0x18] sm:$0xff]  ;;  %v11_v2 = vld [vmem:[%s5102_s0] sm:$0xff]  ;;  %90 = vmatprep.mubr.f32.mxu0 %v5109_v3  ;;  %555 = vmatprep.mubr.f32.mxu1 %v5109_v3  ;;  %s3900_s21 = smov 16   ;;  %s3901_s22 = smov 113   ;;  %vm1274_vm1 = vcmask 588800  }
   0x2   :  { %v3938_v4 = vand.u32 4294901760, %v12_v0  ;;  %v3940_v5 = vand.u32 4294901760, %v14_v1  ;;  %v3942_v6 = vand.u32 4294901760, %v11_v2  ;;  %v13_v7 = vld [vmem:[%s5102_s0 + $0x10] sm:$0xff]  ;;  %v3950_v8 = vld [vmem:[%s5103_s1] sm:$0xff]  ;;  %3885 = vset.pattern.permute.xlu0 %v3897_v9  ;;  %1000 = vrot.lane.b32.xlu1 %v5109_v3, %s3898_s19  ;;  %s3902_s23 = smov 1  }
   0x3   :  { %v3954_v10 = vand.u32 4294901760, %v13_v7  ;;  %v22_v11 = vsel %vm5114_vm0, %v3950_v8, 0  ;;  %18 = vperm.xlu0 %3885, %v3950_v8   ;;  %s3903_s24 = smov 127   ;;  %s3904_s25 = smov 120   ;;  %v959_v57 = vand.u32 127, %v958_v54  ;;  %vm1037_vm2 = vcmask 130048  }
   0x4   :  { %25 = vmatprep.subr.mxu0 %v3938_v4  ;;  %490 = vmatprep.subr.mxu1 %v3940_v5  ;;  %v3961_v12 = vand.u32 4294901760, %v22_v11  ;;  %v103_v13 = vsub.f32 %v12_v0, %v3938_v4  ;;  %v568_v14 = vsub.f32 %v14_v1, %v3940_v5  ;;  %v109_v15 = vsub.f32 %v11_v2, %v3942_v6  ;;  %s3905_s26 = smov 112   ;;  %s3906_s27 = smov 111  }
   0x5   :  { %27 = vmatpush1.msra.mxu0 %v3942_v6  ;;  %492 = vmatpush1.msra.mxu1 %v3954_v10  ;;  %v574_v16 = vsub.f32 %v13_v7, %v3954_v10  ;;  %v962_v60 = vadd.s32 384, %v959_v57  ;;  %v963_v61 = vand.u32 255, %v959_v57  ;;  %v960_v2 = vadd.s32 128, %v959_v57  ;;  %s3907_s28 = smov 48  }
   0x6   :  { %v92_v17 = vsub.f32 %v22_v11, %v3961_v12  ;;  %v104_v18 = vand.u32 4294901760, %v103_v13  ;;  %v569_v19 = vand.u32 4294901760, %v568_v14  ;;  %v110_v20 = vand.u32 4294901760, %v109_v15  ;;  %1058 = vrot.lane.b32.xlu1 %v5109_v3, %s3899_s20 }
   0x7   :  { %v575_v21 = vand.u32 4294901760, %v574_v16  ;;  %1027 = vrot.lane.b32.xlu0 %v5109_v3, %s3900_s21  ;;  %v966_v1 = vand.u32 255, %v962_v60  ;;  %v4102_v7 = vshra.s32 %v963_v61, 4  ;;  %vm1010_vm5 = vcmask 138240  }
   0x8   :  { %v93_v22 = vand.u32 4294901760, %v92_v17  ;;  %v105_v23 = vsub.f32 %v103_v13, %v104_v18  ;;  %v570_v24 = vsub.f32 %v568_v14, %v569_v19  ;;  %v111_v25 = vsub.f32 %v109_v15, %v110_v20 }
   0x9   :  { %v576_v26 = vsub.f32 %v574_v16, %v575_v21  ;;  %vm983_vm4 = vcmp.ge.s32.totalorder %v4102_v7, 1  ;;  %vm1068_vm7 = vcmask 121856   ;;  %vm1095_vm15 = vcmask 7168  }
   0xa   :  { %v94_v27 = vsub.f32 %v92_v17, %v93_v22  ;;  %v106_v28 = vand.u32 4294901760, %v105_v23  ;;  %v571_v29 = vand.u32 4294901760, %v570_v24  ;;  %1155 = vrot.lane.b32.xlu1 %v5109_v3, %s3901_s22  ;;  %v112_v30 = vand.u32 4294901760, %v111_v25 }
   0xb   :  { %1085 = vrot.lane.b32.xlu0 %v5109_v3, %s3902_s23  ;;  %v577_v32 = vand.u32 4294901760, %v576_v26 }
   0xc   :  { %v95_v31 = vand.u32 4294901760, %v94_v27  ;;  %107 = vmatprep.subr.mxu0 %v106_v28  ;;  %572 = vmatprep.subr.mxu1 %v571_v29 }
   0xe   :  { %96 = vmatmul.mubr.f32.vlgmr.msra.gmra.mrb[0].mxu0 %v95_v31  ;;  %561 = vmatmul.mubr.f32.vlgmr.msra.gmra.mrb[0].mxu1 %v95_v31 }
   0xf   :  { %113 = vmatpush1.msra.mxu0 %v112_v30  ;;  %176 = vmatprep.mubr.f32.mxu0 %v5109_v3 }
  0x10   :  { %578 = vmatpush1.msra.mxu1 %v577_v32  ;;  %641 = vmatprep.mubr.f32.mxu1 %v5109_v3 }
  0x11   :  { %186 = vmatprep.subr.mxu0 %v103_v13  ;;  %651 = vmatprep.subr.mxu1 %v568_v14 }
  0x12   :  { %1124 = vrot.lane.b32.xlu0 %v5109_v3, %s3903_s24  ;;  %1182 = vrot.lane.b32.xlu1 %v5109_v3, %s3905_s26 }
  0x16   :  { %178 = vmatmul.mubr.f32.vlgmr.msra.gmra.mrb[0].mxu0 %v3961_v12  ;;  %643 = vmatmul.mubr.f32.vlgmr.msra.gmra.mrb[0].mxu1 %v3961_v12 }
  0x17   :  { %189 = vmatpush1.msra.mxu0 %v109_v15  ;;  %252 = vmatprep.mubr.f32.mxu0 %v5109_v3 }
  0x18   :  { %654 = vmatpush1.msra.mxu1 %v574_v16  ;;  %717 = vmatprep.mubr.f32.mxu1 %v5109_v3  ;;  %v4112_v16 = vshra.s32 %v966_v1, 4 }
  0x19   :  { %262 = vmatprep.subr.mxu0 %v3938_v4  ;;  %727 = vmatprep.subr.mxu1 %v3940_v5 }
  0x1a   :  { %1272 = vrot.lane.b32.xlu0 %v3950_v8, %s3904_s25  ;;  %vm986_vm10 = vcmp.ge.s32.totalorder %v4112_v16, 1 }
  0x1e   :  { %255 = vmatmul.mubr.f32.vlgmr.msra.gmra.mrb[0].mxu0 %v92_v17  ;;  %720 = vmatmul.mubr.f32.vlgmr.msra.gmra.mrb[0].mxu1 %v92_v17  ;;  %v964_v17 = vand.u32 255, %v960_v2 }
  0x1f   :  { %264 = vmatpush1.msra.mxu0 %v3942_v6  ;;  %327 = vmatprep.mubr.f32.mxu0 %v5109_v3 }
  0x20   :  { %729 = vmatpush1.msra.mxu1 %v3954_v10  ;;  %792 = vmatprep.mubr.f32.mxu1 %v5109_v3  ;;  %v4152_v28 = vshra.s32 %v964_v17, 4 }
  0x21   :  { %340 = vmatprep.subr.mxu0 %v104_v18  ;;  %805 = vmatprep.subr.mxu1 %v569_v19 }
  0x22   :  { %vm984_vm13 = vcmp.ge.s32.totalorder %v4152_v28, 1 }
  0x26   :  { %331 = vmatmul.mubr.f32.vlgmr.msra.gmra.mrb[0].mxu0 %v93_v22  ;;  %796 = vmatmul.mubr.f32.vlgmr.msra.gmra.mrb[0].mxu1 %v93_v22 }
  0x27   :  { %344 = vmatpush1.msra.mxu0 %v110_v20  ;;  %407 = vmatprep.mubr.f32.mxu0 %v5109_v3 }
  0x28   :  { %809 = vmatpush1.msra.mxu1 %v575_v21  ;;  %872 = vmatprep.mubr.f32.mxu1 %v5109_v3 }
  0x29   :  { %416 = vmatprep.subr.mxu0 %v3938_v4  ;;  %881 = vmatprep.subr.mxu1 %v3940_v5  ;;  %v961_v4 = vadd.s32 256, %v959_v57 }
  0x2b   :  { %v965_v18 = vand.u32 255, %v961_v4 }
  0x2d   :  { %v4154_v29 = vshra.s32 %v965_v18, 4  ;;  %v4195_v60 = vand.u32 15, %v965_v18 }
  0x2e   :  { %409 = vmatmul.mubr.f32.vlgmr.msra.gmra.mrb[0].mxu0 %v3961_v12  ;;  %874 = vmatmul.mubr.f32.vlgmr.msra.gmra.mrb[0].mxu1 %v3961_v12 }
  0x2f   :  { %418 = vmatpush1.msra.mxu0 %v3942_v6  ;;  %481 = vmatprep.mubr.f32.mxu0 %v5109_v3  ;;  %v4100_v6 = vand.u32 15, %v963_v61  ;;  %vm985_vm14 = vcmp.ge.s32.totalorder %v4154_v29, 1 }
  0x30   :  { %883 = vmatpush1.msra.mxu1 %v3954_v10  ;;  %946 = vmatprep.mubr.f32.mxu1 %v5109_v3 }
  0x31   :  { %vm975_vm3 = vcmp.ge.s32.totalorder %v4100_v6, 1  ;;  %vm979_vm6 = vcmp.le.s32.totalorder %v4100_v6, 14 }
  0x32   :  { %vm991_vm9 = vmand %vm983_vm4, %vm975_vm3 }
  0x33   :  { %vm1054_vm11 = vmand %vm983_vm4, %vm979_vm6 }
  0x36   :  { %483 = vmatmul.mubr.f32.vlgmr.msra.gmra.mrb[0].mxu0 %v3961_v12  ;;  %948 = vmatmul.mubr.f32.vlgmr.msra.gmra.mrb[0].mxu1 %v3961_v12  ;;  %v4108_v12 = vand.u32 15, %v966_v1 }
  0x37   :  { %2032 = vmatprep.mubr.f32.mxu1 %v5109_v3  ;;  %1359 = vmatprep.mubr.f32.mxu0 %v5109_v3 }
  0x38   :  { %vm978_vm8 = vcmp.ge.s32.totalorder %v4108_v12, 1 }
  0x39   :  { %vm994_vm12 = vmand %vm986_vm10, %vm978_vm8 }
  0x74   :  { %v1001_v47 = vpop.permute.xlu1 %1000 }
  0x78   :  { %v1059_v49 = vpop.permute.xlu1 %1058 }
  0x7c   :  { %v4082_v51 = vpop.permute.xlu1 %1155 }
  0x82   :  { %v19_v33 = vpop.permute.xlu0 %18 }
  0x84   :  { %v4084_v53 = vpop.permute.xlu1 %1182 }
  0x86   :  { %v1028_v46 = vpop.permute.xlu0 %1027 }
  0x8a   :  { %v4078_v48 = vpop.permute.xlu0 %1085 }
  0x8e   :  { %v4080_v50 = vpop.permute.xlu0 %1124 }
  0x92   :  { %v1273_v52 = vpop.permute.xlu0 %1272 }
  0x93   :  { %v1275_v62 = vsel %vm1274_vm1, %v1273_v52, 0 }
  0x94   :  { %v4098_v5 = vand.u32 4294901760, %v1275_v62 }
  0x96   :  { %5205 = vst [vmem:[#allocation3_spill] sm:$0xff] %v4098_v5  ;;  %v4115_v19 = vsub.f32 %v1275_v62, %v4098_v5 }
  0x98   :  { %5206 = vst [vmem:[#allocation4_spill] sm:$0xff] %v4115_v19  ;;  %v4157_v30 = vand.u32 4294901760, %v4115_v19 }
  0x9a   :  { %5211 = vst [vmem:[#allocation9_spill] sm:$0xff] %v4157_v30  ;;  %v1363_v52 = vsub.f32 %v4115_v19, %v4157_v30 }
 0x109   :  { %v484_v34 = vpop.f32.mrb[0].mxu0  ;;  %v949_v35 = vpop.f32.mrb[0].mxu1 }
 0x10a   :  { %v3797_v36 = vadd.f32 %v484_v34, %v19_v33  ;;  %v3799_v37 = vadd.f32 %v949_v35, %v19_v33  ;;  %v486_v38 = vpop.f32.mrb[1].mxu0  ;;  %v951_v39 = vpop.f32.mrb[1].mxu1 }
 0x10b   :  { %v3800_v42 = vadd.f32 %v951_v39, %v19_v33  ;;  %v3798_v43 = vadd.f32 %v486_v38, %v19_v33 }
 0x10c   :  { %v4009_v40 = vmax.f32 %v3797_v36, 0.0  ;;  %v4011_v41 = vmax.f32 %v3799_v37, 0.0 }
 0x10d   :  { %v4025_v44 = vmax.f32 %v3800_v42, 0.0  ;;  %v4031_v45 = vmax.f32 %v3798_v43, 0.0 }
 0x10e   :  { %1006 = vrot.lane.b32.xlu1 %v4011_v41, %s3898_s19  ;;  %1002 = vrot.lane.b32.xlu0 %v4009_v40, %s3898_s19  ;;  %v5113_v9 = vand.u32 4294901760, %v4011_v41  ;;  %v5112_v14 = vand.u32 4294901760, %v4009_v40 }
 0x10f   :  { %v5111_v10 = vand.u32 4294901760, %v4025_v44  ;;  %v5115_v15 = vand.u32 4294901760, %v4031_v45 }
 0x110   :  { %v4125_v21 = vsub.f32 %v4011_v41, %v5113_v9  ;;  %v4138_v25 = vsub.f32 %v4009_v40, %v5112_v14 }
 0x111   :  { %v4130_v22 = vsub.f32 %v4025_v44, %v5111_v10  ;;  %v4143_v26 = vsub.f32 %v4031_v45, %v5115_v15 }
 0x112   :  { %1029 = vrot.lane.b32.xlu1 %v4009_v40, %s3900_s21  ;;  %1120 = vrot.lane.b32.xlu0 %v4011_v41, %s3903_s24  ;;  %5207 = vst [vmem:[#allocation5_spill] sm:$0xff] %v4125_v21  ;;  %5209 = vst [vmem:[#allocation7_spill] sm:$0xff] %v4138_v25  ;;  %v5106_v34 = vand.u32 4294901760, %v4125_v21  ;;  %v5105_v42 = vand.u32 4294901760, %v4138_v25 }
 0x113   :  { %5208 = vst [vmem:[#allocation6_spill] sm:$0xff] %v4130_v22  ;;  %5210 = vst [vmem:[#allocation8_spill] sm:$0xff] %v4143_v26  ;;  %v5108_v33 = vand.u32 4294901760, %v4130_v22  ;;  %v5107_v39 = vand.u32 4294901760, %v4143_v26 }
 0x114   :  { %v4200_v61 = vsub.f32 %v4125_v21, %v5106_v34  ;;  %v4241_v34 = vand.u32 4294901760, %v1363_v52 }
 0x115   :  { %v4209_v4 = vsub.f32 %v4130_v22, %v5108_v33 }
 0x116   :  { %1033 = vrot.lane.b32.xlu1 %v4011_v41, %s3900_s21  ;;  %1147 = vrot.lane.b32.xlu0 %v4009_v40, %s3901_s22  ;;  %5212 = vst [vmem:[#allocation10_spill] sm:$0xff] %v4200_v61 }
 0x11a   :  { %1060 = vrot.lane.b32.xlu1 %v4009_v40, %s3899_s20  ;;  %1008 = vrot.lane.b32.xlu0 %v4025_v44, %s3898_s19 }
 0x11e   :  { %1064 = vrot.lane.b32.xlu1 %v4011_v41, %s3899_s20  ;;  %1031 = vrot.lane.b32.xlu0 %v4031_v45, %s3900_s21 }
 0x122   :  { %1087 = vrot.lane.b32.xlu1 %v4009_v40, %s3902_s23  ;;  %1035 = vrot.lane.b32.xlu0 %v4025_v44, %s3900_s21 }
 0x126   :  { %1091 = vrot.lane.b32.xlu1 %v4011_v41, %s3902_s23  ;;  %1062 = vrot.lane.b32.xlu0 %v4031_v45, %s3899_s20 }
 0x12a   :  { %1116 = vrot.lane.b32.xlu1 %v4009_v40, %s3903_s24  ;;  %1066 = vrot.lane.b32.xlu0 %v4025_v44, %s3899_s20 }
 0x12e   :  { %1151 = vrot.lane.b32.xlu1 %v4011_v41, %s3901_s22  ;;  %1089 = vrot.lane.b32.xlu0 %v4031_v45, %s3902_s23 }
 0x132   :  { %1178 = vrot.lane.b32.xlu1 %v4011_v41, %s3905_s26  ;;  %1093 = vrot.lane.b32.xlu0 %v4025_v44, %s3902_s23 }
 0x136   :  { %1174 = vrot.lane.b32.xlu1 %v4009_v40, %s3905_s26  ;;  %1149 = vrot.lane.b32.xlu0 %v4031_v45, %s3901_s22 }
 0x13a   :  { %1004 = vrot.lane.b32.xlu1 %v4031_v45, %s3898_s19  ;;  %1153 = vrot.lane.b32.xlu0 %v4025_v44, %s3901_s22 }
 0x13e   :  { %1118 = vrot.lane.b32.xlu1 %v4031_v45, %s3903_s24  ;;  %1176 = vrot.lane.b32.xlu0 %v4031_v45, %s3905_s26 }
 0x142   :  { %1122 = vrot.lane.b32.xlu1 %v4025_v44, %s3903_s24  ;;  %1180 = vrot.lane.b32.xlu0 %v4025_v44, %s3905_s26 }
 0x146   :  { %1207 = vrot.lane.b32.xlu1 %v4031_v45, %s3906_s27  ;;  %1209 = vrot.lane.b32.xlu0 %v4011_v41, %s3906_s27 }
 0x14a   :  { %1211 = vrot.lane.b32.xlu1 %v4025_v44, %s3906_s27  ;;  %1213 = vrot.lane.b32.xlu0 %v5109_v3, %s3906_s27 }
 0x14e   :  { %1205 = vrot.lane.b32.xlu1 %v4009_v40, %s3906_s27 }
 0x152   :  { %2631 = vrot.lane.b32.xlu1 %v3950_v8, %s3907_s28 }
 0x180   :  { %v4086_v55 = vpop.permute.xlu1 %1006  ;;  %v4088_v56 = vpop.permute.xlu0 %1002 }
 0x181   :  { %v1011_v27 = vsel %vm1010_vm5, %v1001_v47, %v4088_v56 }
 0x182   :  { %v4171_v35 = vsel %vm991_vm9, %v1011_v27, 0.0 }
 0x183   :  { %v5118_v54 = vand.u32 4294901760, %v4171_v35 }
 0x184   :  { %v4090_v58 = vpop.permute.xlu1 %1029  ;;  %v4092_v59 = vpop.permute.xlu0 %1120 }
 0x185   :  { %v1038_v20 = vsel %vm1037_vm2, %v1028_v46, %v4090_v58  ;;  %v4186_v46 = vand.u32 15, %v964_v17  ;;  %v4219_v17 = vsub.f32 %v4138_v25, %v5105_v42  ;;  %v4238_v42 = vsub.f32 %v4171_v35, %v5118_v54 }
 0x186   :  { %v4161_v31 = vsel %vm983_vm4, %v1038_v20, 0.0  ;;  %vm5150_vm4 = vcmp.le.s32.totalorder %v4195_v60, 14 }
 0x187   :  { %v5117_v43 = vand.u32 4294901760, %v4161_v31  ;;  %5214 = vst [vmem:[#allocation12_spill] sm:$0xff] %v4219_v17  ;;  %vm980_vm1 = vcmp.le.s32.totalorder %v4186_v46, 14  ;;  %5216 = vst [vmem:[#allocation14_spill] sm:$0xff] %v4238_v42  ;;  %v5120_v10 = vand.u32 4294901760, %v4238_v42 }
 0x188   :  { %v4094_v63 = vpop.permute.xlu1 %1033  ;;  %v4096_v0 = vpop.permute.xlu0 %1147  ;;  %vm4267_vm9 = vmand %vm984_vm13, %vm980_vm1 }
 0x189   :  { %v4224_v18 = vsub.f32 %v4161_v31, %v5117_v43 }
 0x18b   :  { %5215 = vst [vmem:[#allocation13_spill] sm:$0xff] %v4224_v18 }
 0x18c   :  { %v4106_v11 = vpop.permute.xlu1 %1060  ;;  %v1009_v13 = vpop.permute.xlu0 %1008 }
 0x18d   :  { %v1069_v32 = vsel %vm1068_vm7, %v1059_v49, %v4106_v11  ;;  %v1014_v36 = vsel %vm1010_vm5, %v4086_v55, %v1009_v13  ;;  %v4214_v13 = vsub.f32 %v4143_v26, %v5107_v39 }
 0x18e   :  { %v4188_v47 = vsel %vm1054_vm11, %v1069_v32, 0.0  ;;  %v1022_v57 = vsel %vm994_vm12, %v1014_v36, 0.0  ;;  %vm4283_vm11 = vmand %vm985_vm14, %vm5150_vm4  ;;  %vm5151_vm12 = vcmp.ge.s32.totalorder %v4195_v60, 1  ;;  %vm989_vm4 = vcmp.le.s32.totalorder %v4154_v29, 14 }
 0x18f   :  { %5213 = vst [vmem:[#allocation11_spill] sm:$0xff] %v4214_v13  ;;  %v5116_v20 = vand.u32 4294901760, %v4188_v47  ;;  %v1950_v32 = vand.u32 4294901760, %v1022_v57 }
 0x190   :  { %v4133_v23 = vpop.permute.xlu1 %1064  ;;  %v1032_v24 = vpop.permute.xlu0 %1031 }
 0x191   :  { %v1039_v36 = vsel %vm1037_vm2, %v4090_v58, %v1032_v24  ;;  %v4291_v14 = vsub.f32 %v1022_v57, %v1950_v32 }
 0x192   :  { %v4253_v3 = vsel %vm984_vm13, %v1039_v36, 0.0 }
 0x193   :  { %5223 = vst [vmem:[#allocation17_spill] sm:$0xff] %v4291_v14  ;;  %v5233_v25 = vand.u32 4294901760, %v4291_v14 }
 0x194   :  { %v4179_v37 = vpop.permute.xlu1 %1087  ;;  %v1036_v38 = vpop.permute.xlu0 %1035 }
 0x195   :  { %v1041_v49 = vsel %vm1037_vm2, %v4094_v63, %v1036_v38  ;;  %v1040_v38 = vsel %vm1037_vm2, %v1032_v24, %v4094_v63  ;;  %vm5143_vm2 = vcmp.le.s32.totalorder %v4108_v12, 14  ;;  %v5119_v24 = vand.u32 4294901760, %v4224_v18 }
 0x196   :  { %v1049_v62 = vsel %vm986_vm10, %v1041_v49, 0.0  ;;  %v1096_v49 = vsel %vm1095_vm15, %v4078_v48, %v4179_v37  ;;  %v4257_v52 = vsel %vm985_vm14, %v1040_v38, 0.0  ;;  %v4277_v38 = vsub.f32 %v4188_v47, %v5116_v20  ;;  %vm1057_vm0 = vmand %vm986_vm10, %vm5143_vm2 }
 0x197   :  { %v1954_v27 = vand.u32 4294901760, %v1049_v62  ;;  %v4261_v39 = vsel %vm975_vm3, %v1096_v49, 0.0  ;;  %vm976_vm10 = vcmp.ge.s32.totalorder %v4186_v46, 1  ;;  %v1392_v43 = vsub.f32 %v4224_v18, %v5119_v24  ;;  %vm4422_vm2 = vmand %vm985_vm14, %vm5151_vm12 }
 0x198   :  { %v4204_v1 = vpop.permute.xlu1 %1091  ;;  %v1063_v2 = vpop.permute.xlu0 %1062  ;;  %5220 = vst [vmem:[#allocation16_spill] sm:$0xff] %v4277_v38  ;;  %v5225_v24 = vand.u32 4294901760, %v4253_v3  ;;  %v5258_v8 = vand.u32 4294901760, %v4257_v52 }
 0x199   :  { %v4244_v33 = vpack.c.bf16 %v1954_v27, %v1950_v32  ;;  %v1070_v36 = vsel %vm1068_vm7, %v4106_v11, %v1063_v2  ;;  %v1071_v9 = vsel %vm1068_vm7, %v1063_v2, %v4133_v23  ;;  %v1291_v11 = vand.u32 4294901760, %v4261_v39 }
 0x19a   :  { %v4306_v57 = vsel %vm4267_vm9, %v1070_v36, 0.0  ;;  %v4310_v54 = vsub.f32 %v1049_v62, %v1954_v27  ;;  %v4323_v36 = vsel %vm4283_vm11, %v1071_v9, 0.0  ;;  %v1380_v27 = vsub.f32 %v4238_v42, %v5120_v10 }
 0x19b   :  { %5217 = vst [vmem:[#allocation15_spill] sm:$0xff] %v4244_v33  ;;  %3702 = vmatprep.subr.bf16.mxu1 %v4244_v33  ;;  %v4339_v49 = vsub.f32 %v4253_v3, %v5225_v24  ;;  %v5227_v9 = vand.u32 4294901760, %v4257_v52  ;;  %v4347_v10 = vsub.f32 %v4261_v39, %v1291_v11  ;;  %v5230_v39 = vand.u32 4294901760, %v4277_v38 }
 0x19c   :  { %v4246_v58 = vpop.permute.xlu1 %1116  ;;  %v1067_v63 = vpop.permute.xlu0 %1066  ;;  %5224 = vst [vmem:[#allocation18_spill] sm:$0xff] %v4310_v54  ;;  %vm1157_vm9 = vcmask 924672   ;;  %v1381_v19 = vand.u32 4294901760, %v1380_v27  ;;  %v5231_v48 = vand.u32 4294901760, %v4306_v57  ;;  %vm1126_vm11 = vcmask 1039360  }
 0x19d   :  { %v1072_v15 = vsel %vm1068_vm7, %v4133_v23, %v1067_v63  ;;  %5226 = vst [vmem:[#allocation19_spill] sm:$0xff] %v4339_v49  ;;  %5229 = vst [vmem:[#allocation21_spill] sm:$0xff] %v4347_v10  ;;  %vm5152_vm7 = vcmp.le.s32.totalorder %v4152_v28, 14  ;;  %v4363_v33 = vsub.f32 %v4277_v38, %v5230_v39  ;;  %v5237_v21 = vand.u32 4294901760, %v4310_v54 }
 0x19e   :  { %v4325_v62 = vsel %vm1057_vm0, %v1072_v15, 0.0  ;;  %v4344_v15 = vsub.f32 %v4257_v52, %v5227_v9  ;;  %vm987_vm0 = vcmp.le.s32.totalorder %v4102_v7, 14  ;;  %v1393_v9 = vand.u32 4294901760, %v1392_v43  ;;  %vm4454_vm14 = vmand %vm5152_vm7, %vm976_vm10 }
 0x19f   :  { %v4369_v24 = vsub.f32 %v4306_v57, %v5231_v48  ;;  %v2047_v43 = vsub.f32 %v4291_v14, %v5233_v25  ;;  %v5234_v48 = vand.u32 4294901760, %v4323_v36  ;;  %v5236_v18 = vand.u32 4294901760, %v4325_v62  ;;  %vm4469_vm7 = vmand %vm984_vm13, %vm976_vm10 }
 0x1a0   :  { %v4308_v32 = vpop.permute.xlu1 %1151  ;;  %v1090_v2 = vpop.permute.xlu0 %1089  ;;  %5228 = vst [vmem:[#allocation20_spill] sm:$0xff] %v4344_v15  ;;  %v2059_v26 = vsub.f32 %v4310_v54, %v5237_v21  ;;  %v1405_v42 = vand.u32 4294901760, %v4363_v33  ;;  %v5251_v17 = vand.u32 4294901760, %v4339_v49  ;;  %vm1143_vm13 = vmand %vm987_vm0, %vm975_vm3 }
 0x1a1   :  { %v1097_v23 = vsel %vm1095_vm15, %v4179_v37, %v1090_v2  ;;  %v1098_v63 = vsel %vm1095_vm15, %v1090_v2, %v4204_v1  ;;  %5232 = vst [vmem:[#allocation22_spill] sm:$0xff] %v4369_v24  ;;  %v4385_v30 = vsub.f32 %v4323_v36, %v5234_v48  ;;  %v4390_v25 = vsub.f32 %v4325_v62, %v5236_v18 }
 0x1a2   :  { %v4334_v20 = vsel %vm5151_vm12, %v1098_v63, 0.0  ;;  %v4351_v37 = vsel %vm976_vm10, %v1097_v23, 0.0  ;;  %v4408_v18 = vpack.c.bf16 %v1393_v9, %v1381_v19  ;;  %v2048_v19 = vand.u32 4294901760, %v2047_v43 }
 0x1a3   :  { %5235 = vst [vmem:[#allocation23_spill] sm:$0xff] %v4385_v30  ;;  %v5241_v48 = vand.u32 4294901760, %v4334_v20  ;;  %v5243_v21 = vand.u32 4294901760, %v4351_v37  ;;  %v5247_v9 = vand.u32 4294901760, %v4344_v15  ;;  %v4443_v43 = vsub.f32 %v4339_v49, %v5251_v17 }
 0x1a4   :  { %v4353_v2 = vpop.permute.xlu1 %1178  ;;  %v1094_v63 = vpop.permute.xlu0 %1093  ;;  %vm1184_vm12 = vcmask 916480   ;;  %vm5277_vm10 = vcmp.le.s32.totalorder %v4195_v60, 14 }
 0x1a5   :  { %v1099_v27 = vsel %vm1095_vm15, %v4204_v1, %v1094_v63  ;;  %v5238_v1 = vand.u32 4294901760, %v4171_v35  ;;  %v5239_v63 = vand.u32 4294901760, %v4161_v31  ;;  %v4405_v5 = vsub.f32 %v4334_v20, %v5241_v48 }
 0x1a6   :  { %vm990_vm15 = vcmp.le.s32.totalorder %v4112_v16, 14  ;;  %v4414_v35 = vsub.f32 %v4351_v37, %v5243_v21  ;;  %v1107_v31 = vsel %vm978_vm8, %v1099_v27, 0.0  ;;  %v5250_v27 = vand.u32 4294901760, %v4347_v10 }
 0x1a7   :  { %v4399_v39 = vpack.c.bf16 %v5239_v63, %v5238_v1  ;;  %5242 = vst [vmem:[#allocation25_spill] sm:$0xff] %v4405_v5  ;;  %v4429_v1 = vsub.f32 %v4344_v15, %v5247_v9  ;;  %v5248_v63 = vand.u32 4294901760, %v4188_v47  ;;  %v1962_v15 = vand.u32 4294901760, %v1107_v31  ;;  %vm1146_vm3 = vmand %vm990_vm15, %vm978_vm8 }
 0x1a8   :  { %v4380_v23 = vpop.permute.xlu1 %1174  ;;  %v1150_v38 = vpop.permute.xlu0 %1149  ;;  %5244 = vst [vmem:[#allocation26_spill] sm:$0xff] %v4414_v35  ;;  %v1416_v21 = vsub.f32 %v4347_v10, %v5250_v27  ;;  %v5263_v27 = vand.u32 4294901760, %v4390_v25  ;;  %vm5272_vm8 = vcmp.ge.s32.totalorder %v4195_v60, 1 }
 0x1a9   :  { %5240 = vst [vmem:[#allocation24_spill] sm:$0xff] %v4399_v39  ;;  %v4433_v48 = vpack.c.bf16 %v1291_v11, %v5248_v63  ;;  %v2060_v11 = vand.u32 4294901760, %v2059_v26  ;;  %v1159_v17 = vsel %vm1157_vm9, %v1150_v38, %v4308_v32  ;;  %v5256_v63 = vand.u32 4294901760, %v4369_v24 }
 0x1aa   :  { %v1158_v10 = vsel %vm1157_vm9, %v4096_v0, %v1150_v38  ;;  %v5260_v0 = vand.u32 4294901760, %v4405_v5  ;;  %v4517_v52 = vsub.f32 %v4390_v25, %v5263_v27  ;;  %v5264_v26 = vand.u32 4294901760, %v4414_v35 }
 0x1ab   :  { %5249 = vst [vmem:[#allocation27_spill] sm:$0xff] %v4433_v48  ;;  %v4478_v61 = vsub.f32 %v4369_v24, %v5256_v63  ;;  %v4501_v22 = vpack.c.bf16 %v2060_v11, %v2048_v19  ;;  %v4521_v19 = vsel %vm1143_vm13, %v1158_v10, 0.0  ;;  %v5265_v27 = vand.u32 4294901760, %v4323_v36 }
 0x1ac   :  { %v1005_v14 = vpop.permute.xlu1 %1004  ;;  %v4438_v54 = vpop.permute.xlu0 %1153  ;;  %v4506_v38 = vsub.f32 %v4405_v5, %v5260_v0  ;;  %v5268_v36 = vand.u32 4294901760, %v4306_v57 }
 0x1ad   :  { %v1013_v47 = vsel %vm1010_vm5, %v1005_v14, %v4086_v55  ;;  %v1012_v33 = vsel %vm1010_vm5, %v4088_v56, %v1005_v14  ;;  %v1417_v55 = vand.u32 4294901760, %v1416_v21  ;;  %v5257_v14 = vand.u32 4294901760, %v4385_v30 }
 0x1ae   :  { %v1021_v9 = vsel %vm4422_vm2, %v1013_v47, 0.0  ;;  %v4495_v21 = vsel %vm4454_vm14, %v1159_v17, 0.0  ;;  %v1020_v56 = vsel %vm4469_vm7, %v1012_v33, 0.0  ;;  %v4519_v17 = vsub.f32 %v1107_v31, %v1962_v15  ;;  %vm4586_vm2 = vmand %vm989_vm4, %vm5272_vm8 }
 0x1af   :  { %v1952_v47 = vand.u32 4294901760, %v1021_v9  ;;  %v4491_v63 = vsub.f32 %v4385_v30, %v5257_v14  ;;  %v5261_v14 = vand.u32 4294901760, %v4325_v62  ;;  %v4528_v33 = vsub.f32 %v4414_v35, %v5264_v26 }
 0x1b0   :  { %v1119_v49 = vpop.permute.xlu1 %1118  ;;  %v1177_v13 = vpop.permute.xlu0 %1176  ;;  %v4536_v0 = vpack.c.bf16 %v1417_v55, %v1405_v42  ;;  %v5266_v26 = vand.u32 4294901760, %v4334_v20  ;;  %v1277_v62 = vand.u32 4294901760, %v1020_v56  ;;  %v5269_v20 = vand.u32 4294901760, %v4351_v37 }
 0x1b1   :  { %v4499_v24 = vpack.c.bf16 %v5258_v8, %v1952_v47  ;;  %v4512_v30 = vpack.c.bf16 %v1962_v15, %v5261_v14  ;;  %v1127_v8 = vsel %vm1126_vm11, %v4246_v58, %v1119_v49  ;;  %v1128_v15 = vsel %vm1126_vm11, %v1119_v49, %v4092_v59 }
 0x1b2   :  { %v4543_v11 = vpack.c.bf16 %v5266_v26, %v5265_v27  ;;  %v1161_v58 = vsel %vm1157_vm9, %v4438_v54, %v4082_v51  ;;  %v5166_v49 = vand.u32 4294901760, %v4521_v19  ;;  %v4558_v55 = vpack.c.bf16 %v5269_v20, %v5268_v36 }
 0x1b3   :  { %5259 = vst [vmem:[#allocation28_spill] sm:$0xff] %v4499_v24  ;;  %5262 = vst [vmem:[#allocation29_spill] sm:$0xff] %v4512_v30  ;;  %3704 = vmatpush1.bf16.msra.mxu1 %v4499_v24  ;;  %vm1215_vm5 = vcmask 908288   ;;  %v1135_v14 = vsel %vm979_vm6, %v1127_v8, 0.0  ;;  %v1136_v51 = vsel %vm980_vm1, %v1128_v15, 0.0  ;;  %v5271_v57 = vand.u32 4294901760, %v4495_v21 }
 0x1b4   :  { %v1123_v31 = vpop.permute.xlu1 %1122  ;;  %3706 = vmatprep.subr.bf16.mxu1 %v4512_v30  ;;  %v1181_v10 = vpop.permute.xlu0 %1180  ;;  %5267 = vst [vmem:[#allocation30_spill] sm:$0xff] %v4543_v11  ;;  %5270 = vst [vmem:[#allocation31_spill] sm:$0xff] %v4558_v55  ;;  %v4573_v36 = vsub.f32 %v1021_v9, %v1952_v47  ;;  %v1160_v20 = vsel %vm1157_vm9, %v4308_v32, %v4438_v54  ;;  %v4578_v27 = vsel %vm1146_vm3, %v1161_v58, 0.0  ;;  %v5275_v47 = vand.u32 4294901760, %v4253_v3 }
 0x1b5   :  { %v4571_v37 = vsub.f32 %v4495_v21, %v5271_v57  ;;  %v1185_v9 = vsel %vm1184_vm12, %v4380_v23, %v1177_v13  ;;  %v1129_v54 = vsel %vm1126_vm11, %v4092_v59, %v1123_v31  ;;  %v1130_v32 = vsel %vm1126_vm11, %v1123_v31, %v4080_v50 }
 0x1b6   :  { %v4594_v57 = vpack.c.bf16 %v5275_v47, %v1277_v62  ;;  %v4603_v58 = vsub.f32 %v4521_v19, %v5166_v49  ;;  %v1297_v42 = vand.u32 4294901760, %v1136_v51  ;;  %v1299_v26 = vand.u32 4294901760, %v1135_v14 }
 0x1b7   :  { %3708 = vmatpush1.bf16.msra.mxu1 %v4543_v11  ;;  %v1186_v23 = vsel %vm1184_vm12, %v1177_v13, %v4353_v2  ;;  %v4607_v3 = vsub.f32 %v1020_v56, %v1277_v62  ;;  %v1974_v47 = vand.u32 4294901760, %v4578_v27  ;;  %v1137_v50 = vsel %vm5277_vm10, %v1129_v54, 0.0 }
 0x1b8   :  { %v4580_v8 = vpop.permute.xlu1 %1207  ;;  %5276 = vst [vmem:[#allocation32_spill] sm:$0xff] %v4594_v57  ;;  %v1210_v11 = vpop.permute.xlu0 %1209  ;;  %3606 = vmatprep.subr.bf16.mxu0 %v4594_v57  ;;  %vm5278_vm7 = vcmp.le.s32.totalorder %v4108_v12, 14  ;;  %v4618_v49 = vsel %vm4586_vm2, %v1160_v20, 0.0  ;;  %v1193_v13 = vsel %vm987_vm0, %v1185_v9, 0.0  ;;  %vm5279_vm9 = vcmp.le.s32.totalorder %v4152_v28, 14 }
 0x1b9   :  { %v1138_v59 = vsel %vm5278_vm7, %v1130_v32, 0.0  ;;  %3608 = vmatpush1.bf16.msra.mxu0 %v4399_v39  ;;  %v1194_v30 = vsel %vm5279_vm9, %v1186_v23, 0.0  ;;  %v1972_v54 = vand.u32 4294901760, %v1137_v50  ;;  %v1187_v32 = vsel %vm1184_vm12, %v4353_v2, %v1181_v10 }
 0x1ba   :  { %v1970_v56 = vand.u32 4294901760, %v1138_v59  ;;  %v1188_v31 = vsel %vm1184_vm12, %v1181_v10, %v4084_v53  ;;  %3610 = vmatprep.subr.bf16.mxu0 %v4558_v55  ;;  %v4630_v20 = vsub.f32 %v1136_v51, %v1297_v42  ;;  %v4632_v15 = vsub.f32 %v1135_v14, %v1299_v26  ;;  %vm5281_vm12 = vmmov %vm5279_vm9 }
 0x1bb   :  { %v1196_v9 = vsel %vm990_vm15, %v1188_v31, 0.0  ;;  %v5280_v39 = vand.u32 4294901760, %v4519_v17  ;;  %v1976_v2 = vand.u32 4294901760, %v4618_v49  ;;  %v4644_v53 = vsub.f32 %v4578_v27, %v1974_v47  ;;  %vm4655_vm11 = vmand %vm5281_vm12, %vm980_vm1 }
 0x1bc   :  { %v1212_v62 = vpop.permute.xlu1 %1211  ;;  %v1307_v10 = vand.u32 4294901760, %v1193_v13  ;;  %v1305_v51 = vand.u32 4294901760, %v1194_v30  ;;  %v4646_v55 = vsub.f32 %v1138_v59, %v1970_v56  ;;  %v1195_v14 = vsel %vm989_vm4, %v1187_v32, 0.0  ;;  %v1214_v24 = vpop.permute.xlu0 %1213  ;;  %vm5287_vm1 = vmmov %vm5278_vm7 }
 0x1bd   :  { %v4639_v23 = vsub.f32 %v4519_v17, %v5280_v39  ;;  %3612 = vmatpush1.bf16.msra.mxu0 %v4433_v48  ;;  %v5284_v27 = vand.u32 4294901760, %v4031_v45  ;;  %v5285_v59 = vand.u32 4294901760, %v4573_v36  ;;  %v5286_v32 = vand.u32 4294901760, %v4011_v41  ;;  %vm1204_vm14 = vmand %vm990_vm15, %vm5287_vm1 }
 0x1be   :  { %v1978_v46 = vand.u32 4294901760, %v1196_v9  ;;  %v1217_v28 = vsel %vm1215_vm5, %v4580_v8, %v1210_v11  ;;  %v5288_v45 = vand.u32 4294901760, %v4009_v40  ;;  %v5289_v41 = vand.u32 4294901760, %v4025_v44  ;;  %vm4700_vm15 = vmand %vm987_vm0, %vm979_vm6 }
 0x1bf   :  { %v4661_v31 = vpack.c.bf16 %v1297_v42, %v5284_v27  ;;  %v4666_v57 = vsub.f32 %v4573_v36, %v5285_v59  ;;  %v4670_v48 = vpack.c.bf16 %v1972_v54, %v5286_v32  ;;  %v5185_v27 = vand.u32 4294901760, %v4630_v20  ;;  %vm5295_vm6 = vmmov %vm5277_vm10 }
 0x1c0   :  { %v4680_v42 = vpack.c.bf16 %v1299_v26, %v5288_v45  ;;  %v5184_v59 = vand.u32 4294901760, %v4632_v15  ;;  %v4687_v32 = vpack.c.bf16 %v1970_v56, %v5289_v41  ;;  %v1206_v5 = vpop.permute.xlu1 %1205  ;;  %v5290_v12 = vand.u32 4294901760, %v4521_v19  ;;  %vm4719_vm0 = vmand %vm989_vm4, %vm5295_vm6 }
 0x1c1   :  { %3614 = vmatprep.subr.bf16.mxu0 %v4661_v31  ;;  %v4693_v16 = vsub.f32 %v1193_v13, %v1307_v10  ;;  %v1980_v40 = vand.u32 4294901760, %v1195_v14  ;;  %v1219_v26 = vsel %vm1215_vm5, %v1212_v62, %v1214_v24  ;;  %v5186_v44 = vand.u32 4294901760, %v4646_v55 }
 0x1c2   :  { %v4691_v35 = vpack.c.bf16 %v1307_v10, %v5290_v12  ;;  %v1225_v19 = vsel %vm4655_vm11, %v1217_v28, 0.0  ;;  %3710 = vmatprep.subr.bf16.mxu1 %v4687_v32  ;;  %v1227_v13 = vsel %vm1204_vm14, %v1219_v26, 0.0  ;;  %3616 = vmatpush1.bf16.msra.mxu0 %v4680_v42  ;;  %v5294_v24 = vand.u32 4294901760, %v4495_v21 }
 0x1c3   :  { %v4713_v6 = vsub.f32 %v1137_v50, %v1972_v54  ;;  %v1218_v10 = vsel %vm1215_vm5, %v1210_v11, %v1212_v62  ;;  %3712 = vmatpush1.bf16.msra.mxu1 %v4670_v48  ;;  %v4725_v39 = vpack.c.bf16 %v1978_v46, %v1974_v47  ;;  %v1216_v21 = vsel %vm1215_vm5, %v1206_v5, %v4580_v8 }
 0x1c4   :  { %5291 = vst [vmem:[#allocation33_spill] sm:$0xff] %v4691_v35  ;;  %v4711_v56 = vpack.c.bf16 %v1305_v51, %v5294_v24  ;;  %v4729_v28 = vsub.f32 %v1196_v9, %v1978_v46  ;;  %v4731_v50 = vand.u32 4294901760, %v1227_v13  ;;  %v1224_v29 = vsel %vm4700_vm15, %v1216_v21, 0.0 }
 0x1c5   :  { %v5299_v60 = vand.u32 4294901760, %v4607_v3  ;;  %v4739_v62 = vsub.f32 %v1194_v30, %v1305_v51  ;;  %v5183_v47 = vand.u32 4294901760, %v4693_v16  ;;  %v4742_v54 = vpack.c.bf16 %v1980_v40, %v1976_v2  ;;  %3714 = vmatprep.subr.bf16.mxu1 %v4725_v39 }
 0x1c6   :  { %5298 = vst [vmem:[#allocation34_spill] sm:$0xff] %v4731_v50  ;;  %3618 = vmatprep.subr.bf16.mxu0 %v4711_v56  ;;  %v4744_v5 = vand.u32 4294901760, %v1225_v19  ;;  %v4747_v8 = vsub.f32 %v1195_v14, %v1980_v40  ;;  %v1226_v9 = vsel %vm4719_vm0, %v1218_v10, 0.0  ;;  %v4751_v46 = vand.u32 4294901760, %v1224_v29 }
 0x1c7   :  { %v1374_v11 = vsub.f32 %v4607_v3, %v5299_v60  ;;  %3620 = vmatpush1.bf16.msra.mxu0 %v4691_v35  ;;  %v2107_v30 = vsub.f32 %v4646_v55, %v5186_v44  ;;  %v2054_v51 = vand.u32 4294901760, %v4666_v57  ;;  %v5198_v41 = vand.u32 4294901760, %v4713_v6  ;;  %3716 = vmatpush1.bf16.msra.mxu1 %v4742_v54 }
 0x1c8   :  { %5300 = vst [vmem:[#allocation35_spill] sm:$0xff] %v4744_v5  ;;  %5301 = vst [vmem:[#allocation36_spill] sm:$0xff] %v4751_v46  ;;  %1310 = vmatprep.subr.mxu0 %v4744_v5  ;;  %v5302_v12 = vand.u32 4294901760, %v4478_v61  ;;  %v5303_v40 = vand.u32 4294901760, %v4528_v33  ;;  %v4766_v45 = vsub.f32 %v4618_v49, %v1976_v2  ;;  %v5191_v24 = vand.u32 4294901760, %v4729_v28  ;;  %1983 = vmatprep.subr.mxu1 %v4731_v50 }
 0x1c9   :  { %v1375_v14 = vand.u32 4294901760, %v1374_v11  ;;  %v2084_v57 = vand.u32 4294901760, %v4639_v23  ;;  %v2108_v7 = vand.u32 4294901760, %v2107_v30  ;;  %v5197_v10 = vand.u32 4294901760, %v4644_v53 }
 0x1ca   :  { %v3625_v26 = vpack.c.bf16 %v5303_v40, %v5302_v12  ;;  %v5188_v21 = vand.u32 4294901760, %v4739_v62  ;;  %v4773_v60 = vand.u32 4294901760, %v1226_v9  ;;  %v1434_v61 = vsub.f32 %v4630_v20, %v5185_v27 }
 0x1cb   :  { %v1440_v33 = vsub.f32 %v4632_v15, %v5184_v59  ;;  %v4784_v49 = vsub.f32 %v4693_v16, %v5183_v47  ;;  %v5187_v23 = vand.u32 4294901760, %v4747_v8  ;;  %1312 = vmatpush1.msra.mxu0 %v4751_v46  ;;  %v5304_v2 = vand.u32 4294901760, %v4209_v4 }
 0x1cc   :  { %v5190_v30 = vand.u32 4294901760, %v4571_v37  ;;  %v2113_v12 = vsub.f32 %v4713_v6, %v5198_v41  ;;  %1985 = vmatpush1.msra.mxu1 %v4773_v60  ;;  %1365 = vmatmul.mubr.f32.vlgmr.msra.gmra.mrb[2].mxu0 %v4241_v34  ;;  %v5305_v40 = vand.u32 4294901760, %v4443_v43  ;;  %v5306_v59 = vand.u32 4294901760, %v4429_v1 }
 0x1cd   :  { %v3725_v11 = vpack.c.bf16 %v2108_v7, %v5304_v2  ;;  %v5189_v44 = vand.u32 4294901760, %v4766_v45  ;;  %v4802_v4 = vsub.f32 %v1227_v13, %v4731_v50  ;;  %2038 = vmatmul.mubr.f32.vlgmr.msra.gmra.mrb[2].mxu1 %v4241_v34  ;;  %3718 = vmatprep.subr.bf16.mxu1 %v4501_v22  ;;  %v5307_v7 = vand.u32 4294901760, %v4517_v52 }
 0x1ce   :  { %v3621_v47 = vpack.c.bf16 %v5305_v40, %v1375_v14  ;;  %v3719_v27 = vpack.c.bf16 %v5306_v59, %v2054_v51  ;;  %v2131_v43 = vsub.f32 %v4729_v28, %v5191_v24  ;;  %v4812_v14 = vsub.f32 %v1225_v19, %v4744_v5 }
 0x1cf   :  { %v3721_v2 = vpack.c.bf16 %v2084_v57, %v5307_v7  ;;  %v1435_v1 = vand.u32 4294901760, %v1434_v61  ;;  %v1458_v59 = vsub.f32 %v4739_v62, %v5188_v21  ;;  %v5192_v34 = vand.u32 4294901760, %v4603_v58  ;;  %v5311_v61 = vld [vmem:[#allocation6_spill] sm:$0xff] }
 0x1d0   :  { %3622 = vmatprep.subr.bf16.mxu0 %v3621_v47  ;;  %3720 = vmatpush1.bf16.msra.mxu1 %v3719_v27  ;;  %v2137_v22 = vsub.f32 %v4747_v8, %v5187_v23  ;;  %v4822_v52 = vsub.f32 %v1226_v9, %v4773_v60  ;;  %v2119_v27 = vsub.f32 %v4644_v53, %v5197_v10  ;;  %v2114_v19 = vand.u32 4294901760, %v2113_v12 }
 0x1d1   :  { %3624 = vmatpush1.bf16.msra.mxu0 %v4408_v18  ;;  %3722 = vmatprep.subr.bf16.mxu1 %v3721_v2  ;;  %v5308_v13 = vand.u32 4294901760, %v4491_v63  ;;  %v5309_v47 = vand.u32 4294901760, %v4506_v38  ;;  %v1446_v57 = vsub.f32 %v4571_v37, %v5190_v30  ;;  %v5310_v9 = vmov 0.0   ;;  %v5312_v2 = vld [vmem:[#allocation11_spill] sm:$0xff] }
 0x1d2   :  { %3626 = vmatprep.subr.bf16.mxu0 %v3625_v26  ;;  %2198 = vmatprep.mubr.f32.mxu1 %v5310_v9  ;;  %v3741_v18 = vpack.c.bf16 %v4646_v55, %v5311_v61  ;;  %v1441_v40 = vand.u32 4294901760, %v1440_v33  ;;  %v4839_v7 = vsub.f32 %v1224_v29, %v4751_v46  ;;  %v2132_v12 = vand.u32 4294901760, %v2131_v43 }
 0x1d3   :  { %v3723_v51 = vpack.c.bf16 %v5309_v47, %v5308_v13  ;;  %v5196_v26 = vand.u32 4294901760, %v4802_v4  ;;  %1525 = vmatprep.mubr.f32.mxu0 %v5310_v9  ;;  %v3908_v63 = vmov 89   ;;  %v2125_v38 = vsub.f32 %v4766_v45, %v5189_v44 }
 0x1d4   :  { %3886 = vset.pattern.permute.xlu0 %v3908_v63  ;;  %v5313_v13 = vand.u32 4294901760, %v5312_v2  ;;  %v1459_v23 = vand.u32 4294901760, %v1458_v59  ;;  %v5195_v33 = vand.u32 4294901760, %v4812_v14  ;;  %v1452_v29 = vsub.f32 %v4603_v58, %v5192_v34 }
 0x1d5   :  { %3724 = vmatpush1.bf16.msra.mxu1 %v3723_v51  ;;  %v1465_v43 = vand.u32 4294901760, %v4784_v49  ;;  %v2138_v21 = vand.u32 4294901760, %v2137_v22  ;;  %3628 = vmatpush1.bf16.msra.mxu0 %v4536_v0  ;;  %v2120_v63 = vand.u32 4294901760, %v2119_v27  ;;  %v5194_v44 = vand.u32 4294901760, %v4822_v52  ;;  %v5314_v51 = vld [vmem:[#allocation10_spill] sm:$0xff]  ;;  %v5318_v22 = vld [vmem:[#allocation12_spill] sm:$0xff] }
 0x1d6   :  { %v3629_v47 = vpack.c.bf16 %v1435_v1, %v5313_v13  ;;  %3726 = vmatprep.subr.bf16.mxu1 %v3725_v11  ;;  %v5315_v2 = vand.u32 4294901760, %v5314_v51  ;;  %v1447_v59 = vand.u32 4294901760, %v1446_v57  ;;  %v5316_v13 = vand.u32 4294901760, %v5311_v61 }
 0x1d7   :  { %v5317_v30 = vand.u32 4294901760, %v4646_v55  ;;  %v5193_v49 = vand.u32 4294901760, %v4839_v7  ;;  %v5319_v34 = vand.u32 4294901760, %v5318_v22  ;;  %v3729_v11 = vpack.c.bf16 %v2132_v12, %v2120_v63 }
 0x1d8   :  { %3630 = vmatprep.subr.bf16.mxu0 %v3629_v47  ;;  %v3727_v1 = vpack.c.bf16 %v2114_v19, %v5315_v2  ;;  %v2143_v27 = vsub.f32 %v4802_v4, %v5196_v26  ;;  %v4872_v19 = vld [vmem:[%s5103_s1] sm:$0xff]  ;;  %v2126_v57 = vand.u32 4294901760, %v2125_v38  ;;  %v1470_v47 = vsub.f32 %v4812_v14, %v5195_v33  ;;  %v5348_v26 = vld [vmem:[#allocation9_spill] sm:$0xff] }
 0x1d9   :  { %v4861_v24 = vpack.c.bf16 %v5317_v30, %v5316_v13  ;;  %v3631_v0 = vpack.c.bf16 %v1441_v40, %v5319_v34  ;;  %5320 = vst [vmem:[#allocation6_spill] sm:$0xff] %v4872_v19  ;;  %1269 = vperm.xlu0 %3886, %v4872_v19   ;;  %v3633_v30 = vpack.c.bf16 %v1459_v23, %v1447_v59  ;;  %v1453_v34 = vand.u32 4294901760, %v1452_v29  ;;  %v5323_v13 = vld [vmem:[#allocation3_spill] sm:$0xff] }
 0x1da   :  { %3728 = vmatpush1.bf16.msra.mxu1 %v3727_v1  ;;  %v3731_v40 = vpack.c.bf16 %v2138_v21, %v2126_v57  ;;  %v2149_v12 = vsub.f32 %v4822_v52, %v5194_v44  ;;  %v2144_v51 = vand.u32 4294901760, %v2143_v27  ;;  %v1476_v38 = vsub.f32 %v4839_v7, %v5193_v49  ;;  %v5321_v1 = vld [vmem:[#allocation17_spill] sm:$0xff]  ;;  %v5322_v21 = vld [vmem:[#allocation18_spill] sm:$0xff] }
 0x1db   :  { %3632 = vmatpush1.bf16.msra.mxu0 %v3631_v0  ;;  %3730 = vmatprep.subr.bf16.mxu1 %v3729_v11  ;;  %v3635_v63 = vpack.c.bf16 %v1465_v43, %v1453_v34  ;;  %v1471_v23 = vand.u32 4294901760, %v1470_v47  ;;  %v3733_v59 = vpack.c.bf16 %v5322_v21, %v5321_v1  ;;  %v5324_v43 = vld [vmem:[#allocation19_spill] sm:$0xff]  ;;  %v5325_v0 = vld [vmem:[#allocation20_spill] sm:$0xff]  ;;  %v5326_v27 = vld [vmem:[#allocation14_spill] sm:$0xff]  ;;  %v3737_v47 = vpack.c.bf16 %v4519_v17, %v4390_v25 }
 0x1dc   :  { %3634 = vmatprep.subr.bf16.mxu0 %v3633_v30  ;;  %v2150_v29 = vand.u32 4294901760, %v2149_v12  ;;  %v1477_v2 = vand.u32 4294901760, %v1476_v38  ;;  %v3637_v22 = vpack.c.bf16 %v5324_v43, %v4607_v3  ;;  %v3735_v11 = vpack.c.bf16 %v5325_v0, %v4573_v36  ;;  %v5327_v57 = vld [vmem:[#allocation13_spill] sm:$0xff]  ;;  %v5328_v34 = vld [vmem:[#allocation22_spill] sm:$0xff] }
 0x1dd   :  { %v3639_v30 = vpack.c.bf16 %v5327_v57, %v5326_v27  ;;  %v3745_v49 = vpack.c.bf16 %v4729_v28, %v4644_v53  ;;  %v3747_v55 = vpack.c.bf16 %v4747_v8, %v4766_v45  ;;  %v3651_v61 = vpack.c.bf16 %v4693_v16, %v4603_v58 }
 0x1de   :  { %3732 = vmatpush1.bf16.msra.mxu1 %v3731_v40  ;;  %v5329_v40 = vld [vmem:[#allocation26_spill] sm:$0xff]  ;;  %v5347_v44 = vand.u32 4294901760, %v5322_v21  ;;  %v5349_v10 = vand.u32 4294901760, %v4607_v3  ;;  %v5350_v41 = vand.u32 4294901760, %v5324_v43  ;;  %v5356_v3 = vand.u32 4294901760, %v4519_v17 }
 0x1df   :  { %3636 = vmatpush1.bf16.msra.mxu0 %v3635_v63  ;;  %2145 = vmatprep.subr.mxu1 %v2144_v51  ;;  %v3641_v12 = vpack.c.bf16 %v5329_v40, %v5328_v34  ;;  %v5330_v63 = vld [vmem:[#allocation23_spill] sm:$0xff]  ;;  %v5331_v51 = vld [vmem:[#allocation25_spill] sm:$0xff]  ;;  %vm5386_vm4 = vcmask 64512  }
 0x1e0   :  { %1472 = vmatprep.subr.mxu0 %v1471_v23  ;;  %v3739_v38 = vpack.c.bf16 %v5331_v51, %v5330_v63  ;;  %v5332_v23 = vld [vmem:[#allocation16_spill] sm:$0xff]  ;;  %v3669_v19 = vpack.c.bf16 %v5350_v41, %v5349_v10  ;;  %v5358_v41 = vand.u32 4294901760, %v5329_v40  ;;  %v5360_v10 = vand.u32 4294901760, %v5331_v51 }
 0x1e1   :  { %v5370_v51 = vand.u32 4294901760, %v4729_v28 }
 0x1e2   :  { %2151 = vmatpush1.msra.mxu1 %v2150_v29  ;;  %v5333_v29 = vld [vmem:[#allocation21_spill] sm:$0xff] }
 0x1e3   :  { %1478 = vmatpush1.msra.mxu0 %v1477_v2  ;;  %2200 = vmatmul.mubr.f32.vlgmr.msra.gmra.mrb[2].mxu1 %v5323_v13  ;;  %v3643_v2 = vpack.c.bf16 %v5333_v29, %v5332_v23  ;;  %v5362_v17 = vand.u32 4294901760, %v5333_v29 }
 0x1e4   :  { %3734 = vmatprep.subr.bf16.mxu1 %v3733_v59  ;;  %1527 = vmatmul.mubr.f32.vlgmr.msra.gmra.mrb[2].mxu0 %v5323_v13  ;;  %v5334_v59 = vld [vmem:[#allocation8_spill] sm:$0xff] }
 0x1e5   :  { %3638 = vmatprep.subr.bf16.mxu0 %v3637_v22  ;;  %3736 = vmatpush1.bf16.msra.mxu1 %v3735_v11  ;;  %v3645_v22 = vpack.c.bf16 %v4630_v20, %v5334_v59  ;;  %v5335_v11 = vld [vmem:[#allocation5_spill] sm:$0xff] }
 0x1e6   :  { %3640 = vmatpush1.bf16.msra.mxu0 %v3639_v30  ;;  %3738 = vmatprep.subr.bf16.mxu1 %v3737_v47  ;;  %v3743_v30 = vpack.c.bf16 %v4713_v6, %v5335_v11  ;;  %v5336_v47 = vld [vmem:[#allocation7_spill] sm:$0xff]  ;;  %v5365_v43 = vand.u32 4294901760, %v5335_v11  ;;  %v5375_v11 = vand.u32 4294901760, %v4603_v58  ;;  %v5381_v58 = vld [vmem:[#allocation33_spill] sm:$0xff] }
 0x1e7   :  { %3642 = vmatprep.subr.bf16.mxu0 %v3641_v12  ;;  %2306 = vmatprep.mubr.f32.mxu1 %v5310_v9  ;;  %v3647_v12 = vpack.c.bf16 %v4632_v15, %v5336_v47 }
 0x1e8   :  { %1633 = vmatprep.mubr.f32.mxu0 %v5310_v9 }
 0x1e9   :  { %3740 = vmatpush1.bf16.msra.mxu1 %v3739_v38  ;;  %v3649_v38 = vpack.c.bf16 %v4739_v62, %v4571_v37 }
 0x1ea   :  { %3644 = vmatpush1.bf16.msra.mxu0 %v3643_v2  ;;  %3742 = vmatprep.subr.bf16.mxu1 %v3741_v18  ;;  %v5337_v18 = vld [vmem:[#allocation4_spill] sm:$0xff] }
 0x1eb   :  { %3646 = vmatprep.subr.bf16.mxu0 %v3645_v22  ;;  %v5339_v2 = vld [vmem:[#allocation32_spill] sm:$0xff] }
 0x1ec   :  { %v5340_v22 = vld [vmem:[#allocation28_spill] sm:$0xff] }
 0x1ed   :  { %3744 = vmatpush1.bf16.msra.mxu1 %v3743_v30  ;;  %v5341_v30 = vld [vmem:[#allocation24_spill] sm:$0xff] }
 0x1ee   :  { %3648 = vmatpush1.bf16.msra.mxu0 %v3647_v12  ;;  %3746 = vmatprep.subr.bf16.mxu1 %v3745_v49  ;;  %v5338_v49 = vld [vmem:[#allocation15_spill] sm:$0xff]  ;;  %v5342_v12 = vld [vmem:[#allocation29_spill] sm:$0xff] }
 0x1ef   :  { %3650 = vmatprep.subr.bf16.mxu0 %v3649_v38  ;;  %v5343_v38 = vld [vmem:[#allocation31_spill] sm:$0xff] }
 0x1f1   :  { %3748 = vmatpush1.bf16.msra.mxu1 %v3747_v55  ;;  %v5344_v55 = vld [vmem:[#allocation30_spill] sm:$0xff] }
 0x1f2   :  { %3652 = vmatpush1.bf16.msra.mxu0 %v3651_v61  ;;  %2256 = vmatprep.subr.mxu1 %v4802_v4  ;;  %v5345_v61 = vld [vmem:[#allocation27_spill] sm:$0xff] }
 0x1f3   :  { %1583 = vmatprep.subr.mxu0 %v4812_v14 }
 0x1f5   :  { %2259 = vmatpush1.msra.mxu1 %v4822_v52 }
 0x1f6   :  { %1586 = vmatpush1.msra.mxu0 %v4839_v7  ;;  %2309 = vmatmul.mubr.f32.vlgmr.msra.gmra.mrb[2].mxu1 %v5337_v18 }
 0x1f7   :  { %3750 = vmatprep.subr.bf16.mxu1 %v5338_v49  ;;  %1636 = vmatmul.mubr.f32.vlgmr.msra.gmra.mrb[2].mxu0 %v5337_v18  ;;  %v5346_v18 = vand.u32 4294901760, %v5321_v1  ;;  %v5353_v1 = vand.u32 4294901760, %v5326_v27 }
 0x1f8   :  { %3654 = vmatprep.subr.bf16.mxu0 %v5339_v2  ;;  %3752 = vmatpush1.bf16.msra.mxu1 %v5340_v22 }
 0x1f9   :  { %3656 = vmatpush1.bf16.msra.mxu0 %v5341_v30  ;;  %3754 = vmatprep.subr.bf16.mxu1 %v5342_v12  ;;  %v3765_v33 = vpack.c.bf16 %v5347_v44, %v5346_v18  ;;  %v5354_v44 = vand.u32 4294901760, %v5327_v57  ;;  %v5355_v18 = vand.u32 4294901760, %v4390_v25  ;;  %v5361_v25 = vand.u32 4294901760, %v5332_v23 }
 0x1fa   :  { %3658 = vmatprep.subr.bf16.mxu0 %v5343_v38  ;;  %2397 = vmatprep.mubr.f32.mxu1 %v5310_v9  ;;  %v5367_v57 = vand.u32 4294901760, %v5336_v47  ;;  %v5371_v23 = vand.u32 4294901760, %v4571_v37  ;;  %v5377_v37 = vand.u32 4294901760, %v4802_v4  ;;  %v5379_v47 = vand.u32 4294901760, %v4822_v52 }
 0x1fb   :  { %1724 = vmatprep.mubr.f32.mxu0 %v5310_v9  ;;  %v3671_v21 = vpack.c.bf16 %v5354_v44, %v5353_v1 }
 0x1fc   :  { %3756 = vmatpush1.bf16.msra.mxu1 %v5344_v55 }
 0x1fd   :  { %3660 = vmatpush1.bf16.msra.mxu0 %v5345_v61  ;;  %3758 = vmatprep.subr.bf16.mxu1 %v4687_v32 }
 0x1fe   :  { %3662 = vmatprep.subr.bf16.mxu0 %v4661_v31 }
 0x200   :  { %3760 = vmatpush1.bf16.msra.mxu1 %v4670_v48 }
 0x201   :  { %3664 = vmatpush1.bf16.msra.mxu0 %v4680_v42  ;;  %3762 = vmatprep.subr.bf16.mxu1 %v4725_v39 }
 0x202   :  { %3666 = vmatprep.subr.bf16.mxu0 %v4711_v56 }
 0x204   :  { %3764 = vmatpush1.bf16.msra.mxu1 %v4742_v54 }
 0x205   :  { %3668 = vmatpush1.bf16.msra.mxu0 %v4691_v35  ;;  %2348 = vmatprep.subr.mxu1 %v4731_v50  ;;  %v5351_v50 = vand.u32 4294901760, %v4573_v36  ;;  %v5357_v36 = vand.u32 4294901760, %v5328_v34  ;;  %v5368_v34 = vand.u32 4294901760, %v4632_v15 }
 0x206   :  { %1675 = vmatprep.subr.mxu0 %v4744_v5  ;;  %v5352_v5 = vand.u32 4294901760, %v5325_v0  ;;  %v5366_v0 = vand.u32 4294901760, %v4713_v6  ;;  %v5373_v6 = vand.u32 4294901760, %v4766_v45  ;;  %v5380_v45 = vand.u32 4294901760, %v4839_v7 }
 0x207   :  { %v3679_v40 = vpack.c.bf16 %v5368_v34, %v5367_v57 }
 0x208   :  { %2350 = vmatpush1.msra.mxu1 %v4773_v60  ;;  %v3767_v35 = vpack.c.bf16 %v5352_v5, %v5351_v50  ;;  %v3673_v50 = vpack.c.bf16 %v5358_v41, %v5357_v36  ;;  %v5359_v5 = vand.u32 4294901760, %v5330_v63  ;;  %v3775_v27 = vpack.c.bf16 %v5366_v0, %v5365_v43 }
 0x209   :  { %1677 = vmatpush1.msra.mxu0 %v4751_v46  ;;  %2401 = vmatmul.mubr.f32.vlgmr.msra.gmra.mrb[2].mxu1 %v5348_v26  ;;  %v3769_v46 = vpack.c.bf16 %v5356_v3, %v5355_v18  ;;  %v5369_v63 = vand.u32 4294901760, %v4644_v53  ;;  %v5376_v53 = vand.u32 4294901760, %v4693_v16  ;;  %v5382_v16 = vld [vmem:[#allocation34_spill] sm:$0xff] }
 0x20a   :  { %3766 = vmatprep.subr.bf16.mxu1 %v3765_v33  ;;  %1728 = vmatmul.mubr.f32.vlgmr.msra.gmra.mrb[2].mxu0 %v5348_v26  ;;  %v3771_v26 = vpack.c.bf16 %v5360_v10, %v5359_v5  ;;  %v5363_v33 = vand.u32 4294901760, %v5334_v59  ;;  %v5374_v59 = vand.u32 4294901760, %v4747_v8  ;;  %v5383_v8 = vld [vmem:[#allocation35_spill] sm:$0xff] }
 0x20b   :  { %3670 = vmatprep.subr.bf16.mxu0 %v3669_v19  ;;  %3768 = vmatpush1.bf16.msra.mxu1 %v3767_v35  ;;  %v3675_v35 = vpack.c.bf16 %v5362_v17, %v5361_v25  ;;  %v3683_v28 = vpack.c.bf16 %v5376_v53, %v5375_v11  ;;  %v3892_v11 = vld [vmem:[%s5102_s0 + $0x10] sm:$0xff] }
 0x20c   :  { %3672 = vmatpush1.bf16.msra.mxu0 %v3671_v21  ;;  %3770 = vmatprep.subr.bf16.mxu1 %v3769_v46  ;;  %v5364_v46 = vand.u32 4294901760, %v4630_v20  ;;  %v3777_v20 = vpack.c.bf16 %v5370_v51, %v5369_v63  ;;  %v3779_v15 = vpack.c.bf16 %v5374_v59, %v5373_v6 }
 0x20d   :  { %3674 = vmatprep.subr.bf16.mxu0 %v3673_v50  ;;  %2525 = vmatprep.mubr.f32.mxu1 %v5310_v9 }
 0x20e   :  { %1852 = vmatprep.mubr.f32.mxu0 %v5310_v9  ;;  %v3677_v19 = vpack.c.bf16 %v5364_v46, %v5363_v33 }
 0x20f   :  { %3772 = vmatpush1.bf16.msra.mxu1 %v3771_v26 }
 0x210   :  { %3676 = vmatpush1.bf16.msra.mxu0 %v3675_v35  ;;  %3774 = vmatprep.subr.bf16.mxu1 %v4861_v24  ;;  %v5372_v24 = vand.u32 4294901760, %v4739_v62  ;;  %v5378_v62 = vand.u32 4294901760, %v4812_v14 }
 0x211   :  { %3678 = vmatprep.subr.bf16.mxu0 %v3677_v19 }
 0x212   :  { %v3681_v29 = vpack.c.bf16 %v5372_v24, %v5371_v23 }
 0x213   :  { %3776 = vmatpush1.bf16.msra.mxu1 %v3775_v27 }
 0x214   :  { %3680 = vmatpush1.bf16.msra.mxu0 %v3679_v40  ;;  %3778 = vmatprep.subr.bf16.mxu1 %v3777_v20 }
 0x215   :  { %3682 = vmatprep.subr.bf16.mxu0 %v3681_v29 }
 0x217   :  { %3780 = vmatpush1.bf16.msra.mxu1 %v3779_v15 }
 0x218   :  { %3684 = vmatpush1.bf16.msra.mxu0 %v3683_v28  ;;  %2474 = vmatprep.subr.mxu1 %v5377_v37 }
 0x219   :  { %1801 = vmatprep.subr.mxu0 %v5378_v62  ;;  %v3894_v62 = vld [vmem:[%s5102_s0 + $0x18] sm:$0xff] }
 0x21b   :  { %2478 = vmatpush1.msra.mxu1 %v5379_v47 }
 0x21c   :  { %1805 = vmatpush1.msra.mxu0 %v5380_v45  ;;  %2527 = vmatmul.mubr.f32.vlgmr.msra.gmra.mrb[2].mxu1 %v5323_v13 }
 0x21d   :  { %3782 = vmatprep.subr.bf16.mxu1 %v5338_v49  ;;  %1854 = vmatmul.mubr.f32.vlgmr.msra.gmra.mrb[2].mxu0 %v5323_v13 }
 0x21e   :  { %3686 = vmatprep.subr.bf16.mxu0 %v5339_v2  ;;  %3784 = vmatpush1.bf16.msra.mxu1 %v5340_v22 }
 0x21f   :  { %3688 = vmatpush1.bf16.msra.mxu0 %v5341_v30  ;;  %3786 = vmatprep.subr.bf16.mxu1 %v5342_v12 }
 0x220   :  { %3690 = vmatprep.subr.bf16.mxu0 %v5343_v38  ;;  %2615 = vmatprep.mubr.f32.mxu1 %v5310_v9 }
 0x221   :  { %1942 = vmatprep.mubr.f32.mxu0 %v5310_v9 }
 0x222   :  { %3788 = vmatpush1.bf16.msra.mxu1 %v5344_v55 }
 0x223   :  { %3692 = vmatpush1.bf16.msra.mxu0 %v5345_v61  ;;  %3790 = vmatprep.subr.bf16.mxu1 %v4687_v32  ;;  %v5384_v32 = vld [vmem:[#allocation36_spill] sm:$0xff] }
 0x224   :  { %3694 = vmatprep.subr.bf16.mxu0 %v4661_v31  ;;  %v3910_v31 = vmov 91  }
 0x225   :  { %3888 = vset.pattern.permute.xlu0 %v3910_v31 }
 0x226   :  { %3792 = vmatpush1.bf16.msra.mxu1 %v4670_v48  ;;  %v3909_v48 = vmov 90  }
 0x227   :  { %3696 = vmatpush1.bf16.msra.mxu0 %v4680_v42  ;;  %3794 = vmatprep.subr.bf16.mxu1 %v4725_v39  ;;  %v5385_v42 = vld [vmem:[#allocation6_spill] sm:$0xff]  ;;  %v2632_v39 = vpop.permute.xlu1 %2631 }
 0x228   :  { %3698 = vmatprep.subr.bf16.mxu0 %v4711_v56  ;;  %3887 = vset.pattern.permute.xlu1 %v3909_v48  ;;  %v3911_v56 = vmov 92  }
 0x229   :  { %2628 = vperm.xlu1 %3887, %v5385_v42   ;;  %3574 = vperm.xlu0 %3888, %v5385_v42  }
 0x22a   :  { %3796 = vmatpush1.bf16.msra.mxu1 %v4742_v54  ;;  %v2633_v54 = vsel %vm5386_vm4, %v2632_v39, 0 }
 0x22b   :  { %3700 = vmatpush1.bf16.msra.mxu0 %v5381_v58  ;;  %2566 = vmatprep.subr.mxu1 %v5382_v16  ;;  %v3895_v16 = vld [vmem:[%s5102_s0 + $0x8] sm:$0xff] }
 0x22c   :  { %1893 = vmatprep.subr.mxu0 %v5383_v8 }
 0x22d   :  { %3889 = vset.pattern.permute.xlu1 %v3911_v56  ;;  %3890 = vset.pattern.permute.xlu0 %v3911_v56 }
 0x22e   :  { %2568 = vmatpush1.msra.mxu1 %v4773_v60  ;;  %3582 = vperm.xlu1 %3889, %v5385_v42   ;;  %v5054_v60 = vand.u32 4294901760, %v2633_v54 }
 0x22f   :  { %1895 = vmatpush1.msra.mxu0 %v5384_v32  ;;  %2617 = vmatmul.mubr.f32.vlgmr.msra.gmra.mrb[2].mxu1 %v5323_v13 }
 0x230   :  { %1944 = vmatmul.mubr.f32.vlgmr.msra.gmra.mrb[2].mxu0 %v5323_v13  ;;  %3166 = vmatprep.mubr.f32.mxu1 %v5310_v9  ;;  %v2703_v4 = vsub.f32 %v2633_v54, %v5054_v60 }
 0x231   :  { %2701 = vmatprep.mubr.f32.mxu0 %v5310_v9 }
 0x232   :  { %v5057_v52 = vand.u32 4294901760, %v2703_v4 }
 0x234   :  { %v2705_v44 = vsub.f32 %v2703_v4, %v5057_v52 }
 0x236   :  { %v2706_v26 = vand.u32 4294901760, %v2705_v44 }
 0x258   :  { %v1270_v14 = vpop.permute.xlu0 %1269 }
 0x2a8   :  { %v2629_v51 = vpop.permute.xlu1 %2628  ;;  %v3575_v45 = vpop.permute.xlu0 %3574 }
 0x2ad   :  { %v3583_v31 = vpop.permute.xlu1 %3582 }
 0x302   :  { %v2618_v7 = vpop.f32.mrb[2].mxu1 }
 0x303   :  { %v3803_v13 = vadd.f32 %v2618_v7, %v1270_v14  ;;  %v1945_v49 = vpop.f32.mrb[2].mxu0  ;;  %v2620_v2 = vpop.f32.mrb[3].mxu1 }
 0x304   :  { %v3801_v22 = vadd.f32 %v1945_v49, %v1270_v14  ;;  %v3804_v30 = vadd.f32 %v2620_v2, %v1270_v14  ;;  %v1947_v12 = vpop.f32.mrb[3].mxu0 }
 0x305   :  { %v2625_v38 = vmax.f32 %v3803_v13, 0.0  ;;  %v3802_v55 = vadd.f32 %v1947_v12, %v1270_v14 }
 0x306   :  { %v2623_v61 = vmax.f32 %v3801_v22, 0.0  ;;  %v2626_v1 = vmax.f32 %v3804_v30, 0.0 }
 0x307   :  { %v2624_v21 = vmax.f32 %v3802_v55, 0.0  ;;  %v3102_v18 = vand.u32 4294901760, %v2625_v38 }
 0x308   :  { %v2637_v3 = vand.u32 4294901760, %v2623_v61  ;;  %v3100_v36 = vand.u32 4294901760, %v2626_v1 }
 0x309   :  { %v2635_v41 = vand.u32 4294901760, %v2624_v21  ;;  %v3185_v50 = vsub.f32 %v2625_v38, %v3102_v18 }
 0x30a   :  { %v2720_v5 = vsub.f32 %v2623_v61, %v2637_v3  ;;  %v3179_v10 = vsub.f32 %v2626_v1, %v3100_v36  ;;  %3101 = vmatprep.subr.mxu1 %v3100_v36 }
 0x30b   :  { %v2714_v25 = vsub.f32 %v2624_v21, %v2635_v41  ;;  %2636 = vmatprep.subr.mxu0 %v2635_v41  ;;  %3103 = vmatpush1.msra.mxu1 %v3102_v18  ;;  %v3186_v17 = vand.u32 4294901760, %v3185_v50 }
 0x30c   :  { %v2721_v35 = vand.u32 4294901760, %v2720_v5  ;;  %2638 = vmatpush1.msra.mxu0 %v2637_v3  ;;  %3172 = vmatmul.mubr.f32.vlgmr.msra.gmra.mrb[4].mxu1 %v2706_v26  ;;  %v3180_v33 = vand.u32 4294901760, %v3179_v10 }
 0x30d   :  { %2707 = vmatmul.mubr.f32.vlgmr.msra.gmra.mrb[4].mxu0 %v2706_v26  ;;  %v2715_v46 = vand.u32 4294901760, %v2714_v25  ;;  %v3187_v19 = vsub.f32 %v3185_v50, %v3186_v17  ;;  %3252 = vmatprep.mubr.f32.mxu1 %v5310_v9 }
 0x30e   :  { %v2722_v43 = vsub.f32 %v2720_v5, %v2721_v35  ;;  %v3181_v0 = vsub.f32 %v3179_v10, %v3180_v33  ;;  %2787 = vmatprep.mubr.f32.mxu0 %v5310_v9 }
 0x30f   :  { %v2716_v27 = vsub.f32 %v2714_v25, %v2715_v46  ;;  %v3188_v40 = vand.u32 4294901760, %v3187_v19 }
 0x310   :  { %v3182_v57 = vand.u32 4294901760, %v3181_v0  ;;  %v2723_v63 = vand.u32 4294901760, %v2722_v43 }
 0x311   :  { %v2717_v34 = vand.u32 4294901760, %v2716_v27 }
 0x312   :  { %3183 = vmatprep.subr.mxu1 %v3182_v57 }
 0x313   :  { %2718 = vmatprep.subr.mxu0 %v2717_v34  ;;  %3189 = vmatpush1.msra.mxu1 %v3188_v40 }
 0x314   :  { %2724 = vmatpush1.msra.mxu0 %v2723_v63  ;;  %3254 = vmatmul.mubr.f32.vlgmr.msra.gmra.mrb[4].mxu1 %v5054_v60 }
 0x315   :  { %3262 = vmatprep.subr.mxu1 %v3179_v10  ;;  %2789 = vmatmul.mubr.f32.vlgmr.msra.gmra.mrb[4].mxu0 %v5054_v60 }
 0x316   :  { %2797 = vmatprep.subr.mxu0 %v2714_v25  ;;  %3265 = vmatpush1.msra.mxu1 %v3185_v50 }
 0x317   :  { %2800 = vmatpush1.msra.mxu0 %v2720_v5  ;;  %3338 = vmatprep.subr.mxu1 %v3100_v36 }
 0x318   :  { %2873 = vmatprep.subr.mxu0 %v2635_v41  ;;  %3328 = vmatprep.mubr.f32.mxu1 %v5310_v9 }
 0x319   :  { %2863 = vmatprep.mubr.f32.mxu0 %v5310_v9 }
 0x31c   :  { %3331 = vmatmul.mubr.f32.vlgmr.msra.gmra.mrb[4].mxu1 %v2703_v4 }
 0x31d   :  { %3340 = vmatpush1.msra.mxu1 %v3102_v18  ;;  %2866 = vmatmul.mubr.f32.vlgmr.msra.gmra.mrb[4].mxu0 %v2703_v4 }
 0x31e   :  { %2875 = vmatpush1.msra.mxu0 %v2637_v3  ;;  %3416 = vmatprep.subr.mxu1 %v3180_v33 }
 0x31f   :  { %2951 = vmatprep.subr.mxu0 %v2715_v46  ;;  %3403 = vmatprep.mubr.f32.mxu1 %v5310_v9 }
 0x320   :  { %2938 = vmatprep.mubr.f32.mxu0 %v5310_v9 }
 0x324   :  { %3407 = vmatmul.mubr.f32.vlgmr.msra.gmra.mrb[4].mxu1 %v5057_v52 }
 0x325   :  { %3420 = vmatpush1.msra.mxu1 %v3186_v17  ;;  %2942 = vmatmul.mubr.f32.vlgmr.msra.gmra.mrb[4].mxu0 %v5057_v52 }
 0x326   :  { %2955 = vmatpush1.msra.mxu0 %v2721_v35  ;;  %3492 = vmatprep.subr.mxu1 %v3100_v36 }
 0x327   :  { %3027 = vmatprep.subr.mxu0 %v2635_v41  ;;  %3483 = vmatprep.mubr.f32.mxu1 %v5310_v9 }
 0x328   :  { %3018 = vmatprep.mubr.f32.mxu0 %v5310_v9 }
 0x32c   :  { %3485 = vmatmul.mubr.f32.vlgmr.msra.gmra.mrb[4].mxu1 %v5054_v60 }
 0x32d   :  { %3494 = vmatpush1.msra.mxu1 %v3102_v18  ;;  %3020 = vmatmul.mubr.f32.vlgmr.msra.gmra.mrb[4].mxu0 %v5054_v60 }
 0x32e   :  { %3029 = vmatpush1.msra.mxu0 %v2637_v3  ;;  %3557 = vmatprep.mubr.f32.mxu1 %v5310_v9 }
 0x32f   :  { %3092 = vmatprep.mubr.f32.mxu0 %v5310_v9  ;;  %v3893_v9 = vld [vmem:[%s5102_s0] sm:$0xff] }
 0x334   :  { %3559 = vmatmul.mubr.f32.vlgmr.msra.gmra.mrb[4].mxu1 %v5054_v60 }
 0x335   :  { %3094 = vmatmul.mubr.f32.vlgmr.msra.gmra.mrb[4].mxu0 %v5054_v60 }
 0x407   :  { %v3560_v20 = vpop.f32.mrb[4].mxu1 }
 0x408   :  { %v3807_v23 = vadd.f32 %v3560_v20, %v2629_v51  ;;  %v3095_v24 = vpop.f32.mrb[4].mxu0  ;;  %v3562_v29 = vpop.f32.mrb[5].mxu1 }
 0x409   :  { %v3805_v6 = vadd.f32 %v3095_v24, %v2629_v51  ;;  %v3808_v59 = vadd.f32 %v3562_v29, %v2629_v51  ;;  %v3097_v15 = vpop.f32.mrb[5].mxu0 }
 0x40a   :  { %v3567_v53 = vadd.f32 %v3892_v11, %v3807_v23  ;;  %v3806_v28 = vadd.f32 %v3097_v15, %v2629_v51 }
 0x40b   :  { %v3565_v37 = vadd.f32 %v3893_v9, %v3805_v6  ;;  %v3568_v47 = vadd.f32 %v3894_v62, %v3808_v59 }
 0x40c   :  { %v3571_v58 = vmax.f32 %v3567_v53, 0.0  ;;  %v3566_v8 = vadd.f32 %v3895_v16, %v3806_v28 }
 0x40d   :  { %v3569_v32 = vmax.f32 %v3565_v37, 0.0  ;;  %v3572_v48 = vmax.f32 %v3568_v47, 0.0 }
 0x40e   :  { %v3570_v42 = vmax.f32 %v3566_v8, 0.0  ;;  %v3579_v56 = vmul.f32 %v3575_v45, %v3571_v58 }
 0x40f   :  { %v3577_v39 = vmul.f32 %v3575_v45, %v3569_v32  ;;  %v3580_v54 = vmul.f32 %v3575_v45, %v3572_v48 }
 0x410   :  { %v3578_v60 = vmul.f32 %v3575_v45, %v3570_v42  ;;  %v3587_v4 = vadd.f32 %v3583_v31, %v3579_v56 }
 0x411   :  { %v3585_v14 = vadd.f32 %v3583_v31, %v3577_v39  ;;  %v3588_v52 = vadd.f32 %v3583_v31, %v3580_v54 }
 0x412   :  { %v3586_v7 = vadd.f32 %v3583_v31, %v3578_v60  ;;  %v3591_v13 = vadd.f32 %v3892_v11, %v3587_v4 }
 0x413   :  { %v3589_v49 = vadd.f32 %v3893_v9, %v3585_v14  ;;  %v3592_v2 = vadd.f32 %v3894_v62, %v3588_v52 }
 0x414   :  { %v3590_v22 = vadd.f32 %v3895_v16, %v3586_v7  ;;  %v3595_v30 = vmax.f32 %v3591_v13, 0.0 }
 0x415   :  { %v3593_v12 = vmax.f32 %v3589_v49, 0.0  ;;  %v3596_v38 = vmax.f32 %v3592_v2, 0.0 }
 0x416   :  { %v3594_v55 = vmax.f32 %v3590_v22, 0.0  ;;  %3599 = vst [vmem:[%s5104_s2 + $0x10] sm:$0xff] %v3595_v30 }
 0x417   :  { %3597 = vst [vmem:[%s5104_s2] sm:$0xff] %v3593_v12  ;;  %3600 = vst [vmem:[%s5104_s2 + $0x18] sm:$0xff] %v3596_v38 }
 0x418   :  { %3598 = vst [vmem:[%s5104_s2 + $0x8] sm:$0xff] %v3594_v55 }

</bundles_post_ra>
